<compile_context>
chip_gen: v5e
topology: v5e:2x2
jax: 0.10.0
libtpu: 0.0.40
codegen_flags: <defaults>
</compile_context>

<pallas_src>
import functools

import jax
import jax.numpy as jnp
import numpy as np
from jax.experimental import pallas as pl
from jax.experimental.pallas import tpu as pltpu

_LANE = 128
_SUBLANE = 8
_H1 = 512          # fc1 / fc5 width
_H2 = 128          # fc2 / fc4 width
_MIB = 1024 * 1024


def _round_up(x, m):
    return ((x + m - 1) // m) * m


def _cdiv(a, b):
    return -(-a // b)


@functools.lru_cache(maxsize=1)
def _vmem_capacity_bytes():
    """Per-core VMEM capacity; conservative fallback (v7x per-TC = 64 MiB)."""
    try:
        cap = int(pltpu.get_tpu_info().vmem_capacity_bytes)
        if cap > 0:
            return cap
    except Exception:
        pass
    return 64 * _MIB


def _ae_mlp_kernel(x_ref,
                   w1_ref, b1_ref,
                   w2_ref, b2_ref,
                   w3_ref, b3_ref,
                   w4_ref, b4_ref,
                   w5_ref, b5_ref,
                   w6_ref, b6_ref,
                   o_ref, h1_acc):
    """grid = (batch_tiles, k_tiles); fc1 accumulated over the K ("arbitrary") axis."""
    k = pl.program_id(1)
    nk = pl.num_programs(1)

    # NaN -> 0 on the streamed bf16 tile (mirrors `x[torch.isnan(x)] = 0`).
    x = x_ref[...]
    x = jnp.where(jnp.isnan(x), jnp.zeros_like(x), x)

    @pl.when(k == 0)
    def _():
        h1_acc[...] = jnp.zeros_like(h1_acc)

    # fc1 partial product: bf16 operands on the MXU, f32 accumulation.
    h1_acc[...] += jnp.dot(x, w1_ref[...], preferred_element_type=jnp.float32)

    @pl.when(k == nk - 1)
    def _():
        def linear(h_f32, w_ref, b_ref):
            return jnp.dot(h_f32.astype(jnp.bfloat16), w_ref[...],
                           preferred_element_type=jnp.float32) + b_ref[...]

        h = jnp.maximum(h1_acc[...] + b1_ref[...], 0.0)     # fc1 + relu
        h = jnp.maximum(linear(h, w2_ref, b2_ref), 0.0)     # fc2 + relu
        h = jnp.maximum(linear(h, w3_ref, b3_ref), 0.0)     # fc3 + relu (lane-padded latent)
        h = jnp.maximum(linear(h, w4_ref, b4_ref), 0.0)     # fc4 + relu
        h = jnp.maximum(linear(h, w5_ref, b5_ref), 0.0)     # fc5 + relu
        z = linear(h, w6_ref, b6_ref)                       # fc6 (lane-padded out)

        # sigmoid(z) = 1 / (1 + exp(-z)); reciprocal on the EUP slot, clamp absorbs
        # the tiny approx-recip error so the output stays in [0, 1].
        e = jnp.exp(-z)
        o_ref[...] = jnp.clip(pl.reciprocal(1.0 + e, approx=True), 0.0, 1.0)


@functools.partial(jax.jit, static_argnames=("mask_size", "batch_tile", "k_tile"))
def auto_encoder_mlp_forward(x, params, mask_size, batch_tile=None, k_tile=None):
    """x: (B, *image_size); returns (B, *mask_size) float32."""
    B = x.shape[0]
    x_flat = x.reshape(B, -1).astype(jnp.bfloat16)          # Flatten; stream in bf16
    in_feat = x_flat.shape[1]
    out_feat = params["w6"].shape[1]
    latent = params["w3"].shape[1]
    latent_pad = _round_up(latent, _LANE)
    out_pad = _round_up(out_feat, _LANE)
    in_pad0 = _round_up(in_feat, _LANE)

    # ---- generation-aware VMEM budget ----
    vmem_cap = _vmem_capacity_bytes()
    vmem_limit = int(vmem_cap * 0.8)

    # ---- batch tiling: balance the tile over the real batch (minimal padding) ----
    if batch_tile is None:
        batch_tile = 512 if vmem_cap >= 100 * _MIB else 256
    n_bt = max(1, _cdiv(B, batch_tile))
    tb = max(_SUBLANE, _round_up(_cdiv(B, n_bt), _SUBLANE))
    if vmem_cap < 100 * _MIB and B >= 2 * _SUBLANE and _cdiv(B, tb) < 2:
        # v7x-class chip (2 TensorCores): keep >= 2 tiles on the "parallel" batch axis.
        tb = _round_up(_cdiv(B, 2), _SUBLANE)
    b_pad = _round_up(B, tb)
    nb = b_pad // tb

    # ---- resident weights (everything except w1): pad to lane widths, cast ----
    pad_l = latent_pad - latent
    pad_o = out_pad - out_feat
    b1 = params["b1"].astype(jnp.float32)
    w2 = params["w2"].astype(jnp.bfloat16)
    b2 = params["b2"].astype(jnp.float32)
    w3 = jnp.pad(params["w3"], ((0, 0), (0, pad_l))).astype(jnp.bfloat16)
    b3 = jnp.pad(params["b3"], ((0, 0), (0, pad_l))).astype(jnp.float32)
    w4 = jnp.pad(params["w4"], ((0, pad_l), (0, 0))).astype(jnp.bfloat16)
    b4 = params["b4"].astype(jnp.float32)
    w5 = params["w5"].astype(jnp.bfloat16)
    b5 = params["b5"].astype(jnp.float32)
    w6 = jnp.pad(params["w6"], ((0, 0), (0, pad_o))).astype(jnp.bfloat16)
    b6 = jnp.pad(params["b6"], ((0, 0), (0, pad_o))).astype(jnp.float32)
    resident_arrs = (b1, w2, b2, w3, b3, w4, b4, w5, b5, w6, b6)
    resident_bytes = sum(int(a.size) * a.dtype.itemsize for a in resident_arrs)

    # ---- pick fc1 K tile: w1 fully resident if it fits, otherwise stream K ----
    def _usage(tk_, streamed_):
        w1_buf = (2 if streamed_ else 1) * tk_ * _H1 * 2          # bf16 w1 tile(s)
        x_buf = 2 * tb * tk_ * 2                                  # bf16 x double-buffer
        o_buf = 2 * tb * out_pad * 4                              # f32 out double-buffer
        acc = tb * _H1 * 4                                        # fc1 accumulator scratch
        temps = 4 * tb * max(_H1, out_pad, latent_pad) * 4        # in-kernel temporaries
        return resident_bytes + w1_buf + x_buf + o_buf + acc + temps

    if k_tile is not None:
        tk = min(_round_up(int(k_tile), _LANE), in_pad0)
    elif _usage(in_pad0, False) <= vmem_limit:
        tk = in_pad0                                              # w1 fully resident
    else:
        tk = _LANE
        for cand in (8192, 4096, 2048, 1024, 512, 256, _LANE):
            if cand < in_pad0 and _usage(cand, True) <= vmem_limit:
                tk = cand
                break
    streamed = tk < in_pad0
    vmem_budget = _usage(tk, streamed)
    # TODO(synk): add an N-tiled fc6 path (grid axis over out_feat chunks) for mask
    # sizes whose w6 no longer fits resident in VMEM; until then this assert fires.
    assert vmem_budget <= vmem_limit, (
        f"resident weights + streamed buffers ({vmem_budget} B) exceed usable VMEM "
        f"({vmem_limit} B on this chip); an N-tiled fc6 path is required")

    in_pad = _round_up(in_feat, tk)
    nk = in_pad // tk

    # ---- pad the streamed operands ----
    w1 = jnp.pad(params["w1"], ((0, in_pad - in_feat), (0, 0))).astype(jnp.bfloat16)
    if (b_pad, in_pad) != (B, in_feat):
        x_flat = jnp.pad(x_flat, ((0, b_pad - B), (0, in_pad - in_feat)))

    # ---- cost estimate (bf16 input stream, f32 output, exp + reciprocal) ----
    dims = [in_pad, _H1, _H2, latent_pad, _H2, _H1, out_pad]
    flops = 2 * b_pad * sum(d0 * d1 for d0, d1 in zip(dims[:-1], dims[1:]))
    cost = pl.CostEstimate(
        flops=flops,
        transcendentals=2 * b_pad * out_pad,
        bytes_accessed=(resident_bytes + int(w1.size) * 2
                        + b_pad * in_pad * 2 + b_pad * out_pad * 4),
    )

    # ---- BlockSpecs: stream x / w1 K-tiles, hold everything else VMEM-resident ----
    x_spec = pl.BlockSpec((tb, tk), lambda i, k: (i, k))
    w1_spec = pl.BlockSpec(
        (tk, _H1), lambda i, k: (k, 0),
        pipeline_mode=pl.Buffered(2) if streamed else pl.Buffered(1))
    resident_specs = [
        pl.BlockSpec(a.shape, lambda i, k: (0, 0), pipeline_mode=pl.Buffered(1))
        for a in resident_arrs
    ]
    out_spec = pl.BlockSpec((tb, out_pad), lambda i, k: (i, 0))

    out_flat = pl.pallas_call(
        _ae_mlp_kernel,
        out_shape=jax.ShapeDtypeStruct((b_pad, out_pad), jnp.float32),
        grid=(nb, nk),
        in_specs=[x_spec, w1_spec] + resident_specs,
        out_specs=out_spec,
        scratch_shapes=[pltpu.VMEM((tb, _H1), jnp.float32)],
        compiler_params=pltpu.CompilerParams(
            dimension_semantics=("parallel", "arbitrary"),
            vmem_limit_bytes=vmem_limit),
        cost_estimate=cost,
    )(x_flat, w1, *resident_arrs)

    return out_flat[:B, :out_feat].reshape(B, *mask_size).astype(jnp.float32)


def init_params(key, image_size, mask_size, latent_dim):
    """Deterministic init. Weights stored as (in, out) = torch Linear weight transposed."""
    in_feat = int(np.prod(image_size))
    out_feat = int(np.prod(mask_size))
    dims = [in_feat, _H1, _H2, latent_dim, _H2, _H1, out_feat]
    params = {}
    keys = jax.random.split(key, len(dims) - 1)
    for i, (din, dout) in enumerate(zip(dims[:-1], dims[1:]), start=1):
        bound = 1.0 / (din ** 0.5)  # torch.nn.Linear default uniform bound
        kw, kb = jax.random.split(keys[i - 1])
        params[f"w{i}"] = jax.random.uniform(
            kw, (din, dout), jnp.float32, minval=-bound, maxval=bound)
        params[f"b{i}"] = jax.random.uniform(
            kb, (1, dout), jnp.float32, minval=-bound, maxval=bound)
    return params


def _reference_forward(x, params, mask_size):
    """Pure-JAX f32 reference matching the PyTorch module."""
    B = x.shape[0]
    h = x.reshape(B, -1).astype(jnp.float32)
    h = jnp.where(jnp.isnan(h), 0.0, h)
    for i in range(1, 6):
        h = jax.nn.relu(h @ params[f"w{i}"] + params[f"b{i}"])
    h = jax.nn.sigmoid(h @ params["w6"] + params["b6"])
    return h.reshape(B, *mask_size)


if __name__ == "__main__":
    key = jax.random.PRNGKey(0)

    # ---- test 1: small shapes, single K tile, NaN handling ----
    image_size = (1, 16, 16)   # in_feat = 256
    mask_size = (1, 16, 16)    # out_feat = 256
    latent_dim = 32
    batch = 2
    k1, k2 = jax.random.split(key)
    x = jax.random.normal(k1, (batch, *image_size), jnp.float32)
    x = x.at[0, 0, 0, 0].set(jnp.nan)          # exercise the nan-to-zero path
    params = init_params(k2, image_size, mask_size, latent_dim)

    out = jax.block_until_ready(auto_encoder_mlp_forward(x, params, mask_size))
    assert out.shape == (batch, *mask_size), out.shape
    assert bool(jnp.all(jnp.isfinite(out)))
    assert bool(jnp.all((out >= 0.0) & (out <= 1.0)))
    ref = _reference_forward(x, params, mask_size)
    err = float(jnp.max(jnp.abs(out - ref)))
    assert err < 5e-2, err

    # ---- test 2: K-tiled fc1 path, non-lane-aligned mask, batch padding ----
    image_size = (3, 32, 32)   # in_feat = 3072
    mask_size = (1, 20, 20)    # out_feat = 400 (padded to 512 lanes)
    latent_dim = 48
    batch = 20
    k3, k4 = jax.random.split(k2)
    x = jax.random.normal(k3, (batch, *image_size), jnp.float32)
    params = init_params(k4, image_size, mask_size, latent_dim)

    out = jax.block_until_ready(
        auto_encoder_mlp_forward(x, params, mask_size, k_tile=1024))
    assert out.shape == (batch, *mask_size), out.shape
    ref = _reference_forward(x, params, mask_size)
    err = float(jnp.max(jnp.abs(out - ref)))
    assert err < 5e-2, err

    print("KERNEL_OK")
</pallas_src>

<mosaic_0001>
module attributes {stable_mosaic.version = 11 : i64} {
  func.func @_ae_mlp_kernel(%arg0: i32, %arg1: i32, %arg2: memref<8x256xbf16, #tpu.memory_space<vmem>>, %arg3: memref<256x512xbf16, #tpu.memory_space<vmem>>, %arg4: memref<1x512xf32, #tpu.memory_space<vmem>>, %arg5: memref<512x128xbf16, #tpu.memory_space<vmem>>, %arg6: memref<1x128xf32, #tpu.memory_space<vmem>>, %arg7: memref<128x128xbf16, #tpu.memory_space<vmem>>, %arg8: memref<1x128xf32, #tpu.memory_space<vmem>>, %arg9: memref<128x128xbf16, #tpu.memory_space<vmem>>, %arg10: memref<1x128xf32, #tpu.memory_space<vmem>>, %arg11: memref<128x512xbf16, #tpu.memory_space<vmem>>, %arg12: memref<1x512xf32, #tpu.memory_space<vmem>>, %arg13: memref<512x256xbf16, #tpu.memory_space<vmem>>, %arg14: memref<1x256xf32, #tpu.memory_space<vmem>>, %arg15: memref<8x256xf32, #tpu.memory_space<vmem>>, %arg16: memref<8x512xf32, #tpu.memory_space<vmem>>) attributes {dimension_semantics = [#tpu.dimension_semantics<parallel>, #tpu.dimension_semantics<arbitrary>], iteration_bounds = array<i64: 1, 1>, scalar_prefetch = 0 : i64, scratch_operands = 1 : i64, tpu.core_type = #tpu.core_type<tc>, window_params = [{transform_indices = @transform_0, window_bounds = array<i64: 8, 256>}, {pipeline_mode = #tpu.pipeline_mode<synchronous>, transform_indices = @transform_1, window_bounds = array<i64: 256, 512>}, {pipeline_mode = #tpu.pipeline_mode<synchronous>, transform_indices = @transform_2, window_bounds = array<i64: 1, 512>}, {pipeline_mode = #tpu.pipeline_mode<synchronous>, transform_indices = @transform_3, window_bounds = array<i64: 512, 128>}, {pipeline_mode = #tpu.pipeline_mode<synchronous>, transform_indices = @transform_4, window_bounds = array<i64: 1, 128>}, {pipeline_mode = #tpu.pipeline_mode<synchronous>, transform_indices = @transform_5, window_bounds = array<i64: 128, 128>}, {pipeline_mode = #tpu.pipeline_mode<synchronous>, transform_indices = @transform_6, window_bounds = array<i64: 1, 128>}, {pipeline_mode = #tpu.pipeline_mode<synchronous>, transform_indices = @transform_7, window_bounds = array<i64: 128, 128>}, {pipeline_mode = #tpu.pipeline_mode<synchronous>, transform_indices = @transform_8, window_bounds = array<i64: 1, 128>}, {pipeline_mode = #tpu.pipeline_mode<synchronous>, transform_indices = @transform_9, window_bounds = array<i64: 128, 512>}, {pipeline_mode = #tpu.pipeline_mode<synchronous>, transform_indices = @transform_10, window_bounds = array<i64: 1, 512>}, {pipeline_mode = #tpu.pipeline_mode<synchronous>, transform_indices = @transform_11, window_bounds = array<i64: 512, 256>}, {pipeline_mode = #tpu.pipeline_mode<synchronous>, transform_indices = @transform_12, window_bounds = array<i64: 1, 256>}, {transform_indices = @transform_13, window_bounds = array<i64: 8, 256>}]} {
    %c0 = arith.constant 0 : index
    %c0_0 = arith.constant 0 : index
    %0 = vector.load %arg2[%c0, %c0_0] : memref<8x256xbf16, #tpu.memory_space<vmem>>, vector<8x256xbf16>
    %1 = arith.cmpf one, %0, %0 : vector<8x256xbf16>
    %cst = arith.constant 0.000000e+00 : bf16
    %2 = vector.broadcast %cst : bf16 to vector<8x256xbf16>
    %3 = arith.select %1, %2, %0 : vector<8x256xi1>, vector<8x256xbf16>
    %c0_i32 = arith.constant 0 : i32
    %4 = arith.cmpi eq, %arg1, %c0_i32 : i32
    %5 = arith.extui %4 : i1 to i32
    %c0_i32_1 = arith.constant 0 : i32
    %6 = arith.cmpi ne, %5, %c0_i32_1 : i32
    scf.if %6 {
      %cst_11 = arith.constant 0.000000e+00 : f32
      %15 = vector.broadcast %cst_11 : f32 to vector<8x512xf32>
      %c0_12 = arith.constant 0 : index
      %c0_13 = arith.constant 0 : index
      %16 = vector.load %arg16[%c0_12, %c0_13] : memref<8x512xf32, #tpu.memory_space<vmem>>, vector<8x512xf32>
      tpu.vector_store %arg16[%c0_12, %c0_13], %15 {strides = array<i32>} : memref<8x512xf32, #tpu.memory_space<vmem>>, vector<8x512xf32>,
    } else {
    }
    %c0_2 = arith.constant 0 : index
    %c0_3 = arith.constant 0 : index
    %7 = vector.load %arg16[%c0_2, %c0_3] : memref<8x512xf32, #tpu.memory_space<vmem>>, vector<8x512xf32>
    %c0_4 = arith.constant 0 : index
    %c0_5 = arith.constant 0 : index
    %8 = vector.load %arg3[%c0_4, %c0_5] : memref<256x512xbf16, #tpu.memory_space<vmem>>, vector<256x512xbf16>
    %cst_6 = arith.constant dense<0.000000e+00> : vector<8x512xf32>
    %9 = tpu.matmul %3, %8, %cst_6 {dimension_numbers = #tpu.dot_dimension_numbers<[1], [0], [0], [1], [0, 0, 1, 1], [], []>} : vector<8x256xbf16>, vector<256x512xbf16>, vector<8x512xf32> -> vector<8x512xf32>
    %10 = arith.addf %7, %9 : vector<8x512xf32>
    %c0_7 = arith.constant 0 : index
    %c0_8 = arith.constant 0 : index
    %11 = vector.load %arg16[%c0_7, %c0_8] : memref<8x512xf32, #tpu.memory_space<vmem>>, vector<8x512xf32>
    tpu.vector_store %arg16[%c0_7, %c0_8], %10 {strides = array<i32>} : memref<8x512xf32, #tpu.memory_space<vmem>>, vector<8x512xf32>,
    %c0_i32_9 = arith.constant 0 : i32
    %12 = arith.cmpi eq, %arg1, %c0_i32_9 : i32
    %13 = arith.extui %12 : i1 to i32
    %c0_i32_10 = arith.constant 0 : i32
    %14 = arith.cmpi ne, %13, %c0_i32_10 : i32
    scf.if %14 {
      %c0_11 = arith.constant 0 : index
      %c0_12 = arith.constant 0 : index
      %15 = vector.load %arg16[%c0_11, %c0_12] : memref<8x512xf32, #tpu.memory_space<vmem>>, vector<8x512xf32>
      %c0_13 = arith.constant 0 : index
      %c0_14 = arith.constant 0 : index
      %16 = vector.load %arg4[%c0_13, %c0_14] : memref<1x512xf32, #tpu.memory_space<vmem>>, vector<1x512xf32>
      %17 = vector.broadcast %16 : vector<1x512xf32> to vector<8x512xf32>
      %18 = arith.addf %15, %17 : vector<8x512xf32>
      %cst_15 = arith.constant 0.000000e+00 : f32
      %19 = vector.broadcast %cst_15 : f32 to vector<8x512xf32>
      %20 = arith.maximumf %18, %19 : vector<8x512xf32>
      %21 = arith.truncf %20 : vector<8x512xf32> to vector<8x512xbf16>
      %c0_16 = arith.constant 0 : index
      %c0_17 = arith.constant 0 : index
      %22 = vector.load %arg5[%c0_16, %c0_17] : memref<512x128xbf16, #tpu.memory_space<vmem>>, vector<512x128xbf16>
      %cst_18 = arith.constant dense<0.000000e+00> : vector<8x128xf32>
      %23 = tpu.matmul %21, %22, %cst_18 {dimension_numbers = #tpu.dot_dimension_numbers<[1], [0], [0], [1], [0, 0, 1, 1], [], []>} : vector<8x512xbf16>, vector<512x128xbf16>, vector<8x128xf32> -> vector<8x128xf32>
      %c0_19 = arith.constant 0 : index
      %c0_20 = arith.constant 0 : index
      %24 = vector.load %arg6[%c0_19, %c0_20] : memref<1x128xf32, #tpu.memory_space<vmem>>, vector<1x128xf32>
      %25 = vector.broadcast %24 : vector<1x128xf32> to vector<8x128xf32>
      %26 = arith.addf %23, %25 : vector<8x128xf32>
      %cst_21 = arith.constant 0.000000e+00 : f32
      %27 = vector.broadcast %cst_21 : f32 to vector<8x128xf32>
      %28 = arith.maximumf %26, %27 : vector<8x128xf32>
      %29 = arith.truncf %28 : vector<8x128xf32> to vector<8x128xbf16>
      %c0_22 = arith.constant 0 : index
      %c0_23 = arith.constant 0 : index
      %30 = vector.load %arg7[%c0_22, %c0_23] : memref<128x128xbf16, #tpu.memory_space<vmem>>, vector<128x128xbf16>
      %cst_24 = arith.constant dense<0.000000e+00> : vector<8x128xf32>
      %31 = tpu.matmul %29, %30, %cst_24 {dimension_numbers = #tpu.dot_dimension_numbers<[1], [0], [0], [1], [0, 0, 1, 1], [], []>} : vector<8x128xbf16>, vector<128x128xbf16>, vector<8x128xf32> -> vector<8x128xf32>
      %c0_25 = arith.constant 0 : index
      %c0_26 = arith.constant 0 : index
      %32 = vector.load %arg8[%c0_25, %c0_26] : memref<1x128xf32, #tpu.memory_space<vmem>>, vector<1x128xf32>
      %33 = vector.broadcast %32 : vector<1x128xf32> to vector<8x128xf32>
      %34 = arith.addf %31, %33 : vector<8x128xf32>
      %cst_27 = arith.constant 0.000000e+00 : f32
      %35 = vector.broadcast %cst_27 : f32 to vector<8x128xf32>
      %36 = arith.maximumf %34, %35 : vector<8x128xf32>
      %37 = arith.truncf %36 : vector<8x128xf32> to vector<8x128xbf16>
      %c0_28 = arith.constant 0 : index
      %c0_29 = arith.constant 0 : index
      %38 = vector.load %arg9[%c0_28, %c0_29] : memref<128x128xbf16, #tpu.memory_space<vmem>>, vector<128x128xbf16>
      %cst_30 = arith.constant dense<0.000000e+00> : vector<8x128xf32>
      %39 = tpu.matmul %37, %38, %cst_30 {dimension_numbers = #tpu.dot_dimension_numbers<[1], [0], [0], [1], [0, 0, 1, 1], [], []>} : vector<8x128xbf16>, vector<128x128xbf16>, vector<8x128xf32> -> vector<8x128xf32>
      %c0_31 = arith.constant 0 : index
      %c0_32 = arith.constant 0 : index
      %40 = vector.load %arg10[%c0_31, %c0_32] : memref<1x128xf32, #tpu.memory_space<vmem>>, vector<1x128xf32>
      %41 = vector.broadcast %40 : vector<1x128xf32> to vector<8x128xf32>
      %42 = arith.addf %39, %41 : vector<8x128xf32>
      %cst_33 = arith.constant 0.000000e+00 : f32
      %43 = vector.broadcast %cst_33 : f32 to vector<8x128xf32>
      %44 = arith.maximumf %42, %43 : vector<8x128xf32>
      %45 = arith.truncf %44 : vector<8x128xf32> to vector<8x128xbf16>
      %c0_34 = arith.constant 0 : index
      %c0_35 = arith.constant 0 : index
      %46 = vector.load %arg11[%c0_34, %c0_35] : memref<128x512xbf16, #tpu.memory_space<vmem>>, vector<128x512xbf16>
      %cst_36 = arith.constant dense<0.000000e+00> : vector<8x512xf32>
      %47 = tpu.matmul %45, %46, %cst_36 {dimension_numbers = #tpu.dot_dimension_numbers<[1], [0], [0], [1], [0, 0, 1, 1], [], []>} : vector<8x128xbf16>, vector<128x512xbf16>, vector<8x512xf32> -> vector<8x512xf32>
      %c0_37 = arith.constant 0 : index
      %c0_38 = arith.constant 0 : index
      %48 = vector.load %arg12[%c0_37, %c0_38] : memref<1x512xf32, #tpu.memory_space<vmem>>, vector<1x512xf32>
      %49 = vector.broadcast %48 : vector<1x512xf32> to vector<8x512xf32>
      %50 = arith.addf %47, %49 : vector<8x512xf32>
      %cst_39 = arith.constant 0.000000e+00 : f32
      %51 = vector.broadcast %cst_39 : f32 to vector<8x512xf32>
      %52 = arith.maximumf %50, %51 : vector<8x512xf32>
      %53 = arith.truncf %52 : vector<8x512xf32> to vector<8x512xbf16>
      %c0_40 = arith.constant 0 : index
      %c0_41 = arith.constant 0 : index
      %54 = vector.load %arg13[%c0_40, %c0_41] : memref<512x256xbf16, #tpu.memory_space<vmem>>, vector<512x256xbf16>
      %cst_42 = arith.constant dense<0.000000e+00> : vector<8x256xf32>
      %55 = tpu.matmul %53, %54, %cst_42 {dimension_numbers = #tpu.dot_dimension_numbers<[1], [0], [0], [1], [0, 0, 1, 1], [], []>} : vector<8x512xbf16>, vector<512x256xbf16>, vector<8x256xf32> -> vector<8x256xf32>
      %c0_43 = arith.constant 0 : index
      %c0_44 = arith.constant 0 : index
      %56 = vector.load %arg14[%c0_43, %c0_44] : memref<1x256xf32, #tpu.memory_space<vmem>>, vector<1x256xf32>
      %57 = vector.broadcast %56 : vector<1x256xf32> to vector<8x256xf32>
      %58 = arith.addf %55, %57 : vector<8x256xf32>
      %cst_45 = arith.constant 0.000000e+00 : f32
      %59 = vector.broadcast %cst_45 : f32 to vector<8x256xf32>
      %60 = arith.subf %59, %58 : vector<8x256xf32>
      %61 = math.exp %60 : vector<8x256xf32>
      %cst_46 = arith.constant 1.000000e+00 : f32
      %62 = vector.broadcast %cst_46 : f32 to vector<8x256xf32>
      %63 = arith.addf %62, %61 : vector<8x256xf32>
      %64 = tpu.reciprocal %63 {approx = true} : vector<8x256xf32> -> vector<8x256xf32>
      %cst_47 = arith.constant 0.000000e+00 : f32
      %cst_48 = arith.constant 1.000000e+00 : f32
      %65 = vector.broadcast %cst_47 : f32 to vector<8x256xf32>
      %66 = arith.maximumf %65, %64 : vector<8x256xf32>
      %67 = vector.broadcast %cst_48 : f32 to vector<8x256xf32>
      %68 = arith.minimumf %67, %66 : vector<8x256xf32>
      %c0_49 = arith.constant 0 : index
      %c0_50 = arith.constant 0 : index
      %69 = vector.load %arg15[%c0_49, %c0_50] : memref<8x256xf32, #tpu.memory_space<vmem>>, vector<8x256xf32>
      tpu.vector_store %arg15[%c0_49, %c0_50], %68 {strides = array<i32>} : memref<8x256xf32, #tpu.memory_space<vmem>>, vector<8x256xf32>,
    } else {
    }
    return
  }
  func.func @transform_0(%arg0: i32, %arg1: i32) -> (i32, i32) {
    %c0_i32 = arith.constant 0 : i32
    return %arg0, %arg1 : i32, i32
  }
  func.func @transform_1(%arg0: i32, %arg1: i32) -> (i32, i32) {
    %c0_i32 = arith.constant 0 : i32
    %c0_i32_0 = arith.constant 0 : i32
    return %arg1, %c0_i32 : i32, i32
  }
  func.func @transform_2(%arg0: i32, %arg1: i32) -> (i32, i32) {
    %c0_i32 = arith.constant 0 : i32
    %c0_i32_0 = arith.constant 0 : i32
    %c0_i32_1 = arith.constant 0 : i32
    return %c0_i32, %c0_i32_0 : i32, i32
  }
  func.func @transform_3(%arg0: i32, %arg1: i32) -> (i32, i32) {
    %c0_i32 = arith.constant 0 : i32
    %c0_i32_0 = arith.constant 0 : i32
    %c0_i32_1 = arith.constant 0 : i32
    return %c0_i32, %c0_i32_0 : i32, i32
  }
  func.func @transform_4(%arg0: i32, %arg1: i32) -> (i32, i32) {
    %c0_i32 = arith.constant 0 : i32
    %c0_i32_0 = arith.constant 0 : i32
    %c0_i32_1 = arith.constant 0 : i32
    return %c0_i32, %c0_i32_0 : i32, i32
  }
  func.func @transform_5(%arg0: i32, %arg1: i32) -> (i32, i32) {
    %c0_i32 = arith.constant 0 : i32
    %c0_i32_0 = arith.constant 0 : i32
    %c0_i32_1 = arith.constant 0 : i32
    return %c0_i32, %c0_i32_0 : i32, i32
  }
  func.func @transform_6(%arg0: i32, %arg1: i32) -> (i32, i32) {
    %c0_i32 = arith.constant 0 : i32
    %c0_i32_0 = arith.constant 0 : i32
    %c0_i32_1 = arith.constant 0 : i32
    return %c0_i32, %c0_i32_0 : i32, i32
  }
  func.func @transform_7(%arg0: i32, %arg1: i32) -> (i32, i32) {
    %c0_i32 = arith.constant 0 : i32
    %c0_i32_0 = arith.constant 0 : i32
    %c0_i32_1 = arith.constant 0 : i32
    return %c0_i32, %c0_i32_0 : i32, i32
  }
  func.func @transform_8(%arg0: i32, %arg1: i32) -> (i32, i32) {
    %c0_i32 = arith.constant 0 : i32
    %c0_i32_0 = arith.constant 0 : i32
    %c0_i32_1 = arith.constant 0 : i32
    return %c0_i32, %c0_i32_0 : i32, i32
  }
  func.func @transform_9(%arg0: i32, %arg1: i32) -> (i32, i32) {
    %c0_i32 = arith.constant 0 : i32
    %c0_i32_0 = arith.constant 0 : i32
    %c0_i32_1 = arith.constant 0 : i32
    return %c0_i32, %c0_i32_0 : i32, i32
  }
  func.func @transform_10(%arg0: i32, %arg1: i32) -> (i32, i32) {
    %c0_i32 = arith.constant 0 : i32
    %c0_i32_0 = arith.constant 0 : i32
    %c0_i32_1 = arith.constant 0 : i32
    return %c0_i32, %c0_i32_0 : i32, i32
  }
  func.func @transform_11(%arg0: i32, %arg1: i32) -> (i32, i32) {
    %c0_i32 = arith.constant 0 : i32
    %c0_i32_0 = arith.constant 0 : i32
    %c0_i32_1 = arith.constant 0 : i32
    return %c0_i32, %c0_i32_0 : i32, i32
  }
  func.func @transform_12(%arg0: i32, %arg1: i32) -> (i32, i32) {
    %c0_i32 = arith.constant 0 : i32
    %c0_i32_0 = arith.constant 0 : i32
    %c0_i32_1 = arith.constant 0 : i32
    return %c0_i32, %c0_i32_0 : i32, i32
  }
  func.func @transform_13(%arg0: i32, %arg1: i32) -> (i32, i32) {
    %c0_i32 = arith.constant 0 : i32
    %c0_i32_0 = arith.constant 0 : i32
    return %arg0, %c0_i32 : i32, i32
  }
}

</mosaic_0001>

<bundles_post_ra>
// kernel: auto_encoder_mlp_forward.1
= control target key start
LH: loop header
LB: loop body
LE: loop exit
PB: predicated region body
PF: predicated region fallthrough
CT: control target
= control target key end

     0   :  { %s4116_s1 = inlined_call_operand.vmem [shape: bf16[256,512], index: 1, kind: input, shape index: {}]   ;;  %s4117_s0 = inlined_call_operand.vmem [shape: bf16[8,256], index: 0, kind: input, shape index: {}]   ;;  %s4118_s3 = inlined_call_operand.vmem [shape: bf16[512,128], index: 3, kind: input, shape index: {}]   ;;  %s4119_s4 = inlined_call_operand.vmem [shape: f32[1,128], index: 4, kind: input, shape index: {}]   ;;  %s4120_s2 = inlined_call_operand.vmem [shape: f32[1,512], index: 2, kind: input, shape index: {}]   ;;  %s4121_s6 = inlined_call_operand.vmem [shape: f32[1,128], index: 6, kind: input, shape index: {}]   ;;  %s4122_s5 = inlined_call_operand.vmem [shape: bf16[128,128], index: 5, kind: input, shape index: {}]   ;;  %s4123_s7 = inlined_call_operand.vmem [shape: bf16[128,128], index: 7, kind: input, shape index: {}]   ;;  %s4124_s8 = inlined_call_operand.vmem [shape: f32[1,128], index: 8, kind: input, shape index: {}]   ;;  %s4125_s9 = inlined_call_operand.vmem [shape: bf16[128,512], index: 9, kind: input, shape index: {}]   ;;  %s4126_s11 = inlined_call_operand.vmem [shape: bf16[512,256], index: 11, kind: input, shape index: {}]   ;;  %s4127_s10 = inlined_call_operand.vmem [shape: f32[1,512], index: 10, kind: input, shape index: {}]   ;;  %s4128_s12 = inlined_call_operand.vmem [shape: f32[1,256], index: 12, kind: input, shape index: {}]   ;;  %s4129_s13 = inlined_call_operand.vmem [shape: f32[8,256], index: 13, kind: output, shape index: {}]  }
   0x1   :  { %v1966_v0 = vld [vmem:[%s4116_s1 + $0xe0] sm:$0xf]  ;;  %v2714_v1 = vld [vmem:[%s4116_s1 + $0xec] sm:$0xf0]  ;;  %v2712_v5 = vld [vmem:[%s4116_s1 + $0xe4] sm:$0xf] }
   0x2   :  { %v2094_v2 = vld [vmem:[%s4116_s1 + $0x1e0] sm:$0xf]  ;;  %v1967_v3 = vor.u32 %v2714_v1, %v1966_v0  ;;  %v2746_v4 = vld [vmem:[%s4116_s1 + $0x1ec] sm:$0xf0]  ;;  %v1968_v6 = vld [vmem:[%s4116_s1 + $0xf0] sm:$0xf0] }
   0x3   :  { %v2095_v7 = vor.u32 %v2746_v4, %v2094_v2  ;;  %v1971_v8 = vor.u32 %v2712_v5, %v1968_v6  ;;  %v2744_v9 = vld [vmem:[%s4116_s1 + $0x1e4] sm:$0xf]  ;;  %v2096_v10 = vld [vmem:[%s4116_s1 + $0x1f0] sm:$0xf0]  ;;  %v1950_v11 = vld [vmem:[%s4116_s1 + $0xc0] sm:$0xf] }
   0x4   :  { %455 = vmatpush.bf16.msra.mxu0 %v1967_v3  ;;  %v2099_v12 = vor.u32 %v2744_v9, %v2096_v10  ;;  %v2710_v13 = vld [vmem:[%s4116_s1 + $0xcc] sm:$0xf0]  ;;  %v2078_v14 = vld [vmem:[%s4116_s1 + $0x1c0] sm:$0xf]  ;;  %v2708_v18 = vld [vmem:[%s4116_s1 + $0xc4] sm:$0xf] }
   0x5   :  { %v2742_v15 = vld [vmem:[%s4116_s1 + $0x1cc] sm:$0xf0]  ;;  %468 = vmatpush.bf16.msra.mxu1 %v2095_v7  ;;  %481 = vmatpush.bf16.msra.mxu2 %v1971_v8  ;;  %v1951_v16 = vor.u32 %v2710_v13, %v1950_v11  ;;  %v1952_v19 = vld [vmem:[%s4116_s1 + $0xd0] sm:$0xf0]  ;;  %v2740_v20 = vld [vmem:[%s4116_s1 + $0x1c4] sm:$0xf] }
   0x6   :  { %v2079_v17 = vor.u32 %v2742_v15, %v2078_v14  ;;  %494 = vmatpush.bf16.msra.mxu3 %v2099_v12  ;;  %v1955_v21 = vor.u32 %v2708_v18, %v1952_v19  ;;  %v2080_v22 = vld [vmem:[%s4116_s1 + $0x1d0] sm:$0xf0]  ;;  %v1934_v23 = vld [vmem:[%s4116_s1 + $0xa0] sm:$0xf]  ;;  %v2706_v24 = vld [vmem:[%s4116_s1 + $0xac] sm:$0xf0] }
   0x7   :  { %v2083_v25 = vor.u32 %v2740_v20, %v2080_v22  ;;  %v2062_v26 = vld [vmem:[%s4116_s1 + $0x1a0] sm:$0xf]  ;;  %v2738_v27 = vld [vmem:[%s4116_s1 + $0x1ac] sm:$0xf0]  ;;  %v2704_v28 = vld [vmem:[%s4116_s1 + $0xa4] sm:$0xf]  ;;  %v1935_v29 = vor.u32 %v2706_v24, %v1934_v23 }
   0x8   :  { %456 = vmatpush.bf16.msra.mxu0 %v1951_v16  ;;  %v1936_v30 = vld [vmem:[%s4116_s1 + $0xb0] sm:$0xf0]  ;;  %v2736_v31 = vld [vmem:[%s4116_s1 + $0x1a4] sm:$0xf]  ;;  %v2063_v33 = vor.u32 %v2738_v27, %v2062_v26  ;;  %v1918_v35 = vld [vmem:[%s4116_s1 + $0x80] sm:$0xf] }
   0x9   :  { %v2064_v32 = vld [vmem:[%s4116_s1 + $0x1b0] sm:$0xf0]  ;;  %469 = vmatpush.bf16.msra.mxu1 %v2079_v17  ;;  %482 = vmatpush.bf16.msra.mxu2 %v1955_v21  ;;  %v1939_v34 = vor.u32 %v2704_v28, %v1936_v30  ;;  %v2702_v36 = vld [vmem:[%s4116_s1 + $0x8c] sm:$0xf0]  ;;  %v2046_v37 = vld [vmem:[%s4116_s1 + $0x180] sm:$0xf] }
   0xa   :  { %495 = vmatpush.bf16.msra.mxu3 %v2083_v25  ;;  %v2067_v38 = vor.u32 %v2736_v31, %v2064_v32  ;;  %v2734_v39 = vld [vmem:[%s4116_s1 + $0x18c] sm:$0xf0]  ;;  %v2700_v40 = vld [vmem:[%s4116_s1 + $0x84] sm:$0xf]  ;;  %v1920_v41 = vld [vmem:[%s4116_s1 + $0x90] sm:$0xf0]  ;;  %v1919_v44 = vor.u32 %v2702_v36, %v1918_v35 }
   0xb   :  { %v2732_v42 = vld [vmem:[%s4116_s1 + $0x184] sm:$0xf]  ;;  %v2048_v43 = vld [vmem:[%s4116_s1 + $0x190] sm:$0xf0]  ;;  %v2047_v45 = vor.u32 %v2734_v39, %v2046_v37  ;;  %v1923_v46 = vor.u32 %v2700_v40, %v1920_v41  ;;  %v1902_v47 = vld [vmem:[%s4116_s1 + $0x60] sm:$0xf] }
   0xc   :  { %457 = vmatpush.bf16.msra.mxu0 %v1935_v29  ;;  %v2698_v48 = vld [vmem:[%s4116_s1 + $0x6c] sm:$0xf0]  ;;  %v2030_v49 = vld [vmem:[%s4116_s1 + $0x160] sm:$0xf]  ;;  %v2051_v50 = vor.u32 %v2732_v42, %v2048_v43  ;;  %v2696_v52 = vld [vmem:[%s4116_s1 + $0x64] sm:$0xf] }
   0xd   :  { %470 = vmatpush.bf16.msra.mxu1 %v2063_v33  ;;  %483 = vmatpush.bf16.msra.mxu2 %v1939_v34  ;;  %v2730_v51 = vld [vmem:[%s4116_s1 + $0x16c] sm:$0xf0]  ;;  %v1904_v53 = vld [vmem:[%s4116_s1 + $0x70] sm:$0xf0]  ;;  %v2728_v54 = vld [vmem:[%s4116_s1 + $0x164] sm:$0xf]  ;;  %v1903_v56 = vor.u32 %v2698_v48, %v1902_v47 }
   0xe   :  { %496 = vmatpush.bf16.msra.mxu3 %v2067_v38  ;;  %v2032_v55 = vld [vmem:[%s4116_s1 + $0x170] sm:$0xf0]  ;;  %v2031_v57 = vor.u32 %v2730_v51, %v2030_v49  ;;  %v1907_v58 = vor.u32 %v2696_v52, %v1904_v53  ;;  %v1886_v59 = vld [vmem:[%s4116_s1 + $0x40] sm:$0xf]  ;;  %v2694_v60 = vld [vmem:[%s4116_s1 + $0x4c] sm:$0xf0] }
   0xf   :  { %v2014_v61 = vld [vmem:[%s4116_s1 + $0x140] sm:$0xf]  ;;  %v2035_v62 = vor.u32 %v2728_v54, %v2032_v55  ;;  %v2726_v63 = vld [vmem:[%s4116_s1 + $0x14c] sm:$0xf0]  ;;  %v2692_v0 = vld [vmem:[%s4116_s1 + $0x44] sm:$0xf]  ;;  %v1887_v4 = vor.u32 %v2694_v60, %v1886_v59 }
  0x10   :  { %458 = vmatpush.bf16.msra.mxu0 %v1919_v44  ;;  %v1888_v1 = vld [vmem:[%s4116_s1 + $0x50] sm:$0xf0]  ;;  %v2724_v2 = vld [vmem:[%s4116_s1 + $0x144] sm:$0xf]  ;;  %v2015_v5 = vor.u32 %v2726_v63, %v2014_v61  ;;  %v1870_v7 = vld [vmem:[%s4116_s1 + $0x20] sm:$0xf] }
  0x11   :  { %471 = vmatpush.bf16.msra.mxu1 %v2047_v45  ;;  %484 = vmatpush.bf16.msra.mxu2 %v1923_v46  ;;  %v2016_v3 = vld [vmem:[%s4116_s1 + $0x150] sm:$0xf0]  ;;  %v1891_v6 = vor.u32 %v2692_v0, %v1888_v1  ;;  %v2690_v8 = vld [vmem:[%s4116_s1 + $0x2c] sm:$0xf0]  ;;  %v1998_v9 = vld [vmem:[%s4116_s1 + $0x120] sm:$0xf] }
  0x12   :  { %497 = vmatpush.bf16.msra.mxu3 %v2051_v50  ;;  %v2019_v10 = vor.u32 %v2724_v2, %v2016_v3  ;;  %v2722_v11 = vld [vmem:[%s4116_s1 + $0x12c] sm:$0xf0]  ;;  %v2688_v12 = vld [vmem:[%s4116_s1 + $0x24] sm:$0xf]  ;;  %v1872_v13 = vld [vmem:[%s4116_s1 + $0x30] sm:$0xf0]  ;;  %v1871_v16 = vor.u32 %v2690_v8, %v1870_v7 }
  0x13   :  { %v2720_v14 = vld [vmem:[%s4116_s1 + $0x124] sm:$0xf]  ;;  %v2000_v15 = vld [vmem:[%s4116_s1 + $0x130] sm:$0xf0]  ;;  %v1854_v17 = vld [vmem:[%s4116_s1] sm:$0xf]  ;;  %v1999_v20 = vor.u32 %v2722_v11, %v1998_v9  ;;  %v1875_v21 = vor.u32 %v2688_v12, %v1872_v13 }
  0x14   :  { %459 = vmatpush.bf16.msra.mxu0 %v1903_v56  ;;  %v2686_v18 = vld [vmem:[%s4116_s1 + $0xc] sm:$0xf0]  ;;  %v1982_v19 = vld [vmem:[%s4116_s1 + $0x100] sm:$0xf]  ;;  %v2684_v23 = vld [vmem:[%s4116_s1 + $0x4] sm:$0xf]  ;;  %v2003_v25 = vor.u32 %v2720_v14, %v2000_v15 }
  0x15   :  { %472 = vmatpush.bf16.msra.mxu1 %v2031_v57  ;;  %485 = vmatpush.bf16.msra.mxu2 %v1907_v58  ;;  %v2718_v22 = vld [vmem:[%s4116_s1 + $0x10c] sm:$0xf0]  ;;  %v1856_v24 = vld [vmem:[%s4116_s1 + $0x10] sm:$0xf0]  ;;  %v2716_v26 = vld [vmem:[%s4116_s1 + $0x104] sm:$0xf]  ;;  %v1855_v32 = vor.u32 %v2686_v18, %v1854_v17 }
  0x16   :  { %498 = vmatpush.bf16.msra.mxu3 %v2035_v62  ;;  %v1984_v27 = vld [vmem:[%s4116_s1 + $0x110] sm:$0xf0]  ;;  %v1974_v28 = vld [vmem:[%s4116_s1 + $0xe8] sm:$0xf]  ;;  %v2715_v29 = vld [vmem:[%s4116_s1 + $0xf4] sm:$0xf0]  ;;  %v1983_v38 = vor.u32 %v2718_v22, %v1982_v19  ;;  %v1859_v39 = vor.u32 %v2684_v23, %v1856_v24 }
  0x17   :  { %v2102_v30 = vld [vmem:[%s4116_s1 + $0x1e8] sm:$0xf]  ;;  %v45_v31 = vld [vmem:[%s4117_s0] sm:$0xff]  ;;  %v2747_v33 = vld [vmem:[%s4116_s1 + $0x1f4] sm:$0xf0]  ;;  %v1987_v42 = vor.u32 %v2716_v26, %v1984_v27  ;;  %v1975_v43 = vor.u32 %v2715_v29, %v1974_v28 }
  0x18   :  { %460 = vmatpush.bf16.msra.mxu0 %v1887_v4  ;;  %v2713_v34 = vld [vmem:[%s4116_s1 + $0xec] sm:$0xf]  ;;  %v1976_v35 = vld [vmem:[%s4116_s1 + $0xf8] sm:$0xf0]  ;;  %v46_v36 = vunpack.c.l.bf16 %v45_v31  ;;  %v47_v37 = vunpack.c.h.bf16 %v45_v31  ;;  %v1958_v44 = vld [vmem:[%s4116_s1 + $0xc8] sm:$0xf]  ;;  %v2103_v46 = vor.u32 %v2747_v33, %v2102_v30 }
  0x19   :  { %473 = vmatpush.bf16.msra.mxu1 %v2015_v5  ;;  %486 = vmatpush.bf16.msra.mxu2 %v1891_v6  ;;  %v2745_v40 = vld [vmem:[%s4116_s1 + $0x1ec] sm:$0xf]  ;;  %v2104_v41 = vld [vmem:[%s4116_s1 + $0x1f8] sm:$0xf0]  ;;  %v2711_v45 = vld [vmem:[%s4116_s1 + $0xd4] sm:$0xf0]  ;;  %v1979_v47 = vor.u32 %v2713_v34, %v1976_v35 }
  0x1a   :  { %499 = vmatpush.bf16.msra.mxu3 %v2019_v10  ;;  %vm48_vm0 = vcmp.ne.f32.partialorder %v46_v36, %v46_v36  ;;  %vm49_vm1 = vcmp.ne.f32.partialorder %v47_v37, %v47_v37  ;;  %v2086_v48 = vld [vmem:[%s4116_s1 + $0x1c8] sm:$0xf]  ;;  %v2743_v49 = vld [vmem:[%s4116_s1 + $0x1d4] sm:$0xf0]  ;;  %v2107_v50 = vor.u32 %v2745_v40, %v2104_v41  ;;  %v2709_v51 = vld [vmem:[%s4116_s1 + $0xcc] sm:$0xf]  ;;  %v1959_v58 = vor.u32 %v2711_v45, %v1958_v44 }
  0x1b   :  { %vm50_vm2 = vmpackc.low %vm49_vm1, %vm48_vm0  ;;  %v1960_v52 = vld [vmem:[%s4116_s1 + $0xd8] sm:$0xf0]  ;;  %v2741_v54 = vld [vmem:[%s4116_s1 + $0x1cc] sm:$0xf]  ;;  %v2087_v59 = vor.u32 %v2743_v49, %v2086_v48 }
  0x1c   :  { %461 = vmatpush.bf16.msra.mxu0 %v1871_v16  ;;  %v51_v53 = vsel %vm50_vm2, 0, %v45_v31  ;;  %v2088_v55 = vld [vmem:[%s4116_s1 + $0x1d8] sm:$0xf0]  ;;  %v1963_v60 = vor.u32 %v2709_v51, %v1960_v52  ;;  %v1942_v63 = vld [vmem:[%s4116_s1 + $0xa8] sm:$0xf] }
  0x1d   :  { %474 = vmatpush.bf16.msra.mxu1 %v1999_v20  ;;  %487 = vmatpush.bf16.msra.mxu2 %v1875_v21  ;;  %v129_v56 = vunpack.c.l.b16 %v51_v53  ;;  %v130_v57 = vunpack.c.h.b16 %v51_v53  ;;  %v2707_v0 = vld [vmem:[%s4116_s1 + $0xb4] sm:$0xf0]  ;;  %v2070_v1 = vld [vmem:[%s4116_s1 + $0x1a8] sm:$0xf]  ;;  %v2091_v2 = vor.u32 %v2741_v54, %v2088_v55  ;;  %v2705_v4 = vld [vmem:[%s4116_s1 + $0xac] sm:$0xf] }
  0x1e   :  { %500 = vmatpush.bf16.msra.mxu3 %v2003_v25  ;;  %v2739_v3 = vld [vmem:[%s4116_s1 + $0x1b4] sm:$0xf0]  ;;  %v1944_v5 = vld [vmem:[%s4116_s1 + $0xb8] sm:$0xf0]  ;;  %v2737_v6 = vld [vmem:[%s4116_s1 + $0x1ac] sm:$0xf]  ;;  %v1943_v8 = vor.u32 %v2707_v0, %v1942_v63 }
  0x1f   :  { %v3216_v61 = vpack.c.b16 %v129_v56, %v129_v56  ;;  %v3218_v62 = vpack.c.b16 %v130_v57, %v130_v57  ;;  %v2072_v7 = vld [vmem:[%s4116_s1 + $0x1b8] sm:$0xf0]  ;;  %v2071_v9 = vor.u32 %v2739_v3, %v2070_v1  ;;  %v1947_v10 = vor.u32 %v2705_v4, %v1944_v5  ;;  %v1926_v11 = vld [vmem:[%s4116_s1 + $0x88] sm:$0xf]  ;;  %v2703_v12 = vld [vmem:[%s4116_s1 + $0x94] sm:$0xf0] }
  0x20   :  { %462 = vmatpush.bf16.msra.mxu0 %v1855_v32  ;;  %v2054_v13 = vld [vmem:[%s4116_s1 + $0x188] sm:$0xf]  ;;  %v2075_v14 = vor.u32 %v2737_v6, %v2072_v7  ;;  %v2735_v15 = vld [vmem:[%s4116_s1 + $0x194] sm:$0xf0]  ;;  %v2701_v16 = vld [vmem:[%s4116_s1 + $0x8c] sm:$0xf]  ;;  %v1927_v20 = vor.u32 %v2703_v12, %v1926_v11 }
  0x21   :  { %475 = vmatpush.bf16.msra.mxu1 %v1983_v38  ;;  %488 = vmatpush.bf16.msra.mxu2 %v1859_v39  ;;  %v1928_v17 = vld [vmem:[%s4116_s1 + $0x98] sm:$0xf0]  ;;  %v2733_v18 = vld [vmem:[%s4116_s1 + $0x18c] sm:$0xf]  ;;  %v2055_v21 = vor.u32 %v2735_v15, %v2054_v13  ;;  %v1910_v23 = vld [vmem:[%s4116_s1 + $0x68] sm:$0xf] }
  0x22   :  { %501 = vmatpush.bf16.msra.mxu3 %v1987_v42  ;;  %v2056_v19 = vld [vmem:[%s4116_s1 + $0x198] sm:$0xf0]  ;;  %v1931_v22 = vor.u32 %v2701_v16, %v1928_v17  ;;  %v2699_v24 = vld [vmem:[%s4116_s1 + $0x74] sm:$0xf0]  ;;  %v2038_v25 = vld [vmem:[%s4116_s1 + $0x168] sm:$0xf] }
  0x23   :  { %463 = vmatmul.bf16.vlgmr.msra.gmra.mxu0 %v3216_v61  ;;  %v2059_v26 = vor.u32 %v2733_v18, %v2056_v19  ;;  %v2731_v27 = vld [vmem:[%s4116_s1 + $0x174] sm:$0xf0]  ;;  %v2697_v28 = vld [vmem:[%s4116_s1 + $0x6c] sm:$0xf]  ;;  %v1912_v29 = vld [vmem:[%s4116_s1 + $0x78] sm:$0xf0]  ;;  %v1911_v32 = vor.u32 %v2699_v24, %v1910_v23 }
  0x24   :  { %507 = vmatpush.bf16.msrb.mxu0 %v1975_v43  ;;  %489 = vmatmul.bf16.vlgmr.msra.gmra.mxu2 %v3216_v61  ;;  %v2729_v30 = vld [vmem:[%s4116_s1 + $0x16c] sm:$0xf]  ;;  %v2040_v31 = vld [vmem:[%s4116_s1 + $0x178] sm:$0xf0]  ;;  %v2039_v33 = vor.u32 %v2731_v27, %v2038_v25  ;;  %v1915_v34 = vor.u32 %v2697_v28, %v1912_v29  ;;  %v1894_v35 = vld [vmem:[%s4116_s1 + $0x48] sm:$0xf] }
  0x25   :  { %520 = vmatpush.bf16.msrb.mxu1 %v2103_v46  ;;  %533 = vmatpush.bf16.msrb.mxu2 %v1979_v47  ;;  %v2695_v36 = vld [vmem:[%s4116_s1 + $0x54] sm:$0xf0]  ;;  %v2022_v37 = vld [vmem:[%s4116_s1 + $0x148] sm:$0xf]  ;;  %v2043_v38 = vor.u32 %v2729_v30, %v2040_v31  ;;  %v2693_v40 = vld [vmem:[%s4116_s1 + $0x4c] sm:$0xf] }
  0x26   :  { %546 = vmatpush.bf16.msrb.mxu3 %v2107_v50  ;;  %476 = vmatmul.bf16.vlgmr.msra.gmra.mxu1 %v3218_v62  ;;  %v2727_v39 = vld [vmem:[%s4116_s1 + $0x154] sm:$0xf0]  ;;  %v1896_v41 = vld [vmem:[%s4116_s1 + $0x58] sm:$0xf0]  ;;  %v2725_v42 = vld [vmem:[%s4116_s1 + $0x14c] sm:$0xf]  ;;  %v1895_v44 = vor.u32 %v2695_v36, %v1894_v35 }
  0x27   :  { %502 = vmatmul.bf16.vlgmr.msra.gmra.mxu3 %v3218_v62  ;;  %v2024_v43 = vld [vmem:[%s4116_s1 + $0x158] sm:$0xf0]  ;;  %v2023_v45 = vor.u32 %v2727_v39, %v2022_v37  ;;  %v1899_v46 = vor.u32 %v2693_v40, %v1896_v41  ;;  %v1878_v47 = vld [vmem:[%s4116_s1 + $0x28] sm:$0xf]  ;;  %v2691_v48 = vld [vmem:[%s4116_s1 + $0x34] sm:$0xf0] }
  0x28   :  { %508 = vmatpush.bf16.msrb.mxu0 %v1959_v58  ;;  %v2006_v49 = vld [vmem:[%s4116_s1 + $0x128] sm:$0xf]  ;;  %v2027_v50 = vor.u32 %v2725_v42, %v2024_v43  ;;  %v2723_v51 = vld [vmem:[%s4116_s1 + $0x134] sm:$0xf0]  ;;  %v2689_v52 = vld [vmem:[%s4116_s1 + $0x2c] sm:$0xf]  ;;  %v1879_v56 = vor.u32 %v2691_v48, %v1878_v47 }
  0x29   :  { %521 = vmatpush.bf16.msrb.mxu1 %v2087_v59  ;;  %534 = vmatpush.bf16.msrb.mxu2 %v1963_v60  ;;  %v1880_v53 = vld [vmem:[%s4116_s1 + $0x38] sm:$0xf0]  ;;  %v2721_v54 = vld [vmem:[%s4116_s1 + $0x12c] sm:$0xf]  ;;  %v2007_v57 = vor.u32 %v2723_v51, %v2006_v49  ;;  %v1862_v59 = vld [vmem:[%s4116_s1 + $0x8] sm:$0xf] }
  0x2a   :  { %547 = vmatpush.bf16.msrb.mxu3 %v2091_v2  ;;  %v2008_v55 = vld [vmem:[%s4116_s1 + $0x138] sm:$0xf0]  ;;  %v1883_v58 = vor.u32 %v2689_v52, %v1880_v53  ;;  %v2687_v60 = vld [vmem:[%s4116_s1 + $0x14] sm:$0xf0]  ;;  %v1990_v63 = vld [vmem:[%s4116_s1 + $0x108] sm:$0xf] }
  0x2b   :  { %v2011_v0 = vor.u32 %v2721_v54, %v2008_v55  ;;  %v2719_v1 = vld [vmem:[%s4116_s1 + $0x114] sm:$0xf0]  ;;  %v2685_v2 = vld [vmem:[%s4116_s1 + $0xc] sm:$0xf]  ;;  %v1864_v3 = vld [vmem:[%s4116_s1 + $0x18] sm:$0xf0]  ;;  %v1863_v6 = vor.u32 %v2687_v60, %v1862_v59 }
  0x2c   :  { %509 = vmatpush.bf16.msrb.mxu0 %v1943_v8  ;;  %v2717_v4 = vld [vmem:[%s4116_s1 + $0x10c] sm:$0xf]  ;;  %v1992_v5 = vld [vmem:[%s4116_s1 + $0x118] sm:$0xf0]  ;;  %v1991_v7 = vor.u32 %v2719_v1, %v1990_v63  ;;  %v1867_v8 = vor.u32 %v2685_v2, %v1864_v3  ;;  %v2754_v13 = vld [vmem:[%s4118_s3 + $0x30] sm:$0xff] }
  0x2d   :  { %522 = vmatpush.bf16.msrb.mxu1 %v2071_v9  ;;  %535 = vmatpush.bf16.msrb.mxu2 %v1947_v10  ;;  %v1995_v9 = vor.u32 %v2717_v4, %v1992_v5  ;;  %v2755_v10 = vld [vmem:[%s4118_s3 + $0x38] sm:$0xff]  ;;  %v2753_v15 = vld [vmem:[%s4118_s3 + $0x28] sm:$0xff]  ;;  %v2752_v17 = vld [vmem:[%s4118_s3 + $0x20] sm:$0xff] }
  0x2e   :  { %548 = vmatpush.bf16.msrb.mxu3 %v2075_v14  ;;  %v2763_v11 = vld [vmem:[%s4118_s3 + $0x78] sm:$0xff]  ;;  %v2762_v14 = vld [vmem:[%s4118_s3 + $0x70] sm:$0xff]  ;;  %v2761_v16 = vld [vmem:[%s4118_s3 + $0x68] sm:$0xff] }
  0x2f   :  { %v2771_v12 = vld [vmem:[%s4118_s3 + $0xb8] sm:$0xff]  ;;  %v2750_v19 = vld [vmem:[%s4118_s3 + $0x10] sm:$0xff]  ;;  %v2757_v23 = vld [vmem:[%s4118_s3 + $0x48] sm:$0xff] }
  0x30   :  { %510 = vmatpush.bf16.msrb.mxu0 %v1927_v20  ;;  %v2759_v18 = vld [vmem:[%s4118_s3 + $0x58] sm:$0xff]  ;;  %v2758_v20 = vld [vmem:[%s4118_s3 + $0x50] sm:$0xff]  ;;  %v2748_v25 = vld [vmem:[%s4118_s3] sm:$0xff] }
  0x31   :  { %523 = vmatpush.bf16.msrb.mxu1 %v2055_v21  ;;  %536 = vmatpush.bf16.msrb.mxu2 %v1931_v22  ;;  %v2749_v21 = vld [vmem:[%s4118_s3 + $0x8] sm:$0xff]  ;;  %v2770_v22 = vld [vmem:[%s4118_s3 + $0xb0] sm:$0xff]  ;;  %v2779_v24 = vld [vmem:[%s4118_s3 + $0xf8] sm:$0xff] }
  0x32   :  { %549 = vmatpush.bf16.msrb.mxu3 %v2059_v26  ;;  %v2769_v26 = vld [vmem:[%s4118_s3 + $0xa8] sm:$0xff]  ;;  %v2756_v27 = vld [vmem:[%s4118_s3 + $0x40] sm:$0xff]  ;;  %v2778_v28 = vld [vmem:[%s4118_s3 + $0xf0] sm:$0xff] }
  0x33   :  { %v2768_v29 = vld [vmem:[%s4118_s3 + $0xa0] sm:$0xff]  ;;  %v2777_v30 = vld [vmem:[%s4118_s3 + $0xe8] sm:$0xff]  ;;  %v2767_v31 = vld [vmem:[%s4118_s3 + $0x98] sm:$0xff] }
  0x34   :  { %511 = vmatpush.bf16.msrb.mxu0 %v1911_v32  ;;  %v2776_v32 = vld [vmem:[%s4118_s3 + $0xe0] sm:$0xff]  ;;  %v2765_v35 = vld [vmem:[%s4118_s3 + $0x88] sm:$0xff]  ;;  %v2774_v37 = vld [vmem:[%s4118_s3 + $0xd0] sm:$0xff] }
  0x35   :  { %524 = vmatpush.bf16.msrb.mxu1 %v2039_v33  ;;  %537 = vmatpush.bf16.msrb.mxu2 %v1915_v34  ;;  %v2766_v33 = vld [vmem:[%s4118_s3 + $0x90] sm:$0xff]  ;;  %v2775_v34 = vld [vmem:[%s4118_s3 + $0xd8] sm:$0xff]  ;;  %v574_v36 = vld [vmem:[%s4120_s2] sm:$0xf] }
  0x36   :  { %550 = vmatpush.bf16.msrb.mxu3 %v2043_v38  ;;  %v576_v39 = vperm.slane %v574_v36, 0  ;;  %v2764_v40 = vld [vmem:[%s4118_s3 + $0x80] sm:$0xff]  ;;  %v2773_v43 = vld [vmem:[%s4118_s3 + $0xc8] sm:$0xff]  ;;  %v578_v60 = vperm.slane %v574_v36, 2  ;;  %v579_v4 = vperm.slane %v574_v36, 3 }
  0x38   :  { %512 = vmatpush.bf16.msrb.mxu0 %v1895_v44  ;;  %v577_v44 = vperm.slane %v574_v36, 1 }
  0x39   :  { %525 = vmatpush.bf16.msrb.mxu1 %v2023_v45  ;;  %538 = vmatpush.bf16.msrb.mxu2 %v1899_v46 }
  0x3a   :  { %551 = vmatpush.bf16.msrb.mxu3 %v2027_v50  ;;  %v2772_v50 = vld [vmem:[%s4118_s3 + $0xc0] sm:$0xff] }
  0x3c   :  { %513 = vmatpush.bf16.msrb.mxu0 %v1879_v56 }
  0x3d   :  { %526 = vmatpush.bf16.msrb.mxu1 %v2007_v57  ;;  %539 = vmatpush.bf16.msrb.mxu2 %v1883_v58 }
  0x3e   :  { %552 = vmatpush.bf16.msrb.mxu3 %v2011_v0 }
  0x40   :  { %514 = vmatpush.bf16.msrb.mxu0 %v1863_v6 }
  0x41   :  { %527 = vmatpush.bf16.msrb.mxu1 %v1991_v7  ;;  %540 = vmatpush.bf16.msrb.mxu2 %v1867_v8 }
  0x42   :  { %553 = vmatpush.bf16.msrb.mxu3 %v1995_v9 }
  0x43   :  { %515 = vmatmul.bf16.vlgmr.msrb.gmra.mxu0 %v3216_v61 }
  0x44   :  { %856 = vmatpush.bf16.msra.mxu0 %v2755_v10  ;;  %528 = vmatmul.bf16.vlgmr.msrb.gmra.mxu1 %v3218_v62 }
  0x45   :  { %869 = vmatpush.bf16.msra.mxu1 %v2763_v11  ;;  %541 = vmatmul.bf16.vlgmr.msrb.gmra.mxu2 %v3216_v61  ;;  %v2760_v61 = vld [vmem:[%s4118_s3 + $0x60] sm:$0xff] }
  0x46   :  { %554 = vmatmul.bf16.vlgmr.msrb.gmra.mxu3 %v3218_v62  ;;  %882 = vmatpush.bf16.msra.mxu2 %v2771_v12  ;;  %v2751_v62 = vld [vmem:[%s4118_s3 + $0x18] sm:$0xff] }
  0x47   :  { %895 = vmatpush.bf16.msra.mxu3 %v2779_v24 }
  0x48   :  { %857 = vmatpush.bf16.msra.mxu0 %v2754_v13 }
  0x49   :  { %870 = vmatpush.bf16.msra.mxu1 %v2762_v14 }
  0x4a   :  { %883 = vmatpush.bf16.msra.mxu2 %v2770_v22 }
  0x4b   :  { %896 = vmatpush.bf16.msra.mxu3 %v2778_v28  ;;  %v2792_v28 = vld [vmem:[%s4123_s7 + $0x20] sm:$0xff] }
  0x4c   :  { %858 = vmatpush.bf16.msra.mxu0 %v2753_v15  ;;  %v2787_v15 = vld [vmem:[%s4122_s5 + $0x38] sm:$0xff] }
  0x4d   :  { %871 = vmatpush.bf16.msra.mxu1 %v2761_v16  ;;  %v2786_v16 = vld [vmem:[%s4122_s5 + $0x30] sm:$0xff] }
  0x4e   :  { %884 = vmatpush.bf16.msra.mxu2 %v2769_v26  ;;  %v2794_v26 = vld [vmem:[%s4123_s7 + $0x30] sm:$0xff] }
  0x4f   :  { %897 = vmatpush.bf16.msra.mxu3 %v2777_v30  ;;  %v2791_v30 = vld [vmem:[%s4123_s7 + $0x18] sm:$0xff] }
  0x50   :  { %859 = vmatpush.bf16.msra.mxu0 %v2752_v17  ;;  %v2785_v17 = vld [vmem:[%s4122_s5 + $0x28] sm:$0xff] }
  0x51   :  { %872 = vmatpush.bf16.msra.mxu1 %v2760_v61  ;;  %v2784_v61 = vld [vmem:[%s4122_s5 + $0x20] sm:$0xff] }
  0x52   :  { %885 = vmatpush.bf16.msra.mxu2 %v2768_v29  ;;  %v2892_v29 = vld [vmem:[%s4119_s4] ss:$0 sm:$0xff] }
  0x53   :  { %898 = vmatpush.bf16.msra.mxu3 %v2776_v32 }
  0x54   :  { %860 = vmatpush.bf16.msra.mxu0 %v2751_v62  ;;  %v2783_v62 = vld [vmem:[%s4122_s5 + $0x18] sm:$0xff] }
  0x55   :  { %873 = vmatpush.bf16.msra.mxu1 %v2759_v18 }
  0x56   :  { %886 = vmatpush.bf16.msra.mxu2 %v2767_v31 }
  0x57   :  { %899 = vmatpush.bf16.msra.mxu3 %v2775_v34 }
  0x58   :  { %861 = vmatpush.bf16.msra.mxu0 %v2750_v19  ;;  %v2782_v19 = vld [vmem:[%s4122_s5 + $0x10] sm:$0xff] }
  0x59   :  { %874 = vmatpush.bf16.msra.mxu1 %v2758_v20 }
  0x5a   :  { %887 = vmatpush.bf16.msra.mxu2 %v2766_v33  ;;  %v2790_v33 = vld [vmem:[%s4123_s7 + $0x10] sm:$0xff] }
  0x5b   :  { %900 = vmatpush.bf16.msra.mxu3 %v2774_v37 }
  0x5c   :  { %862 = vmatpush.bf16.msra.mxu0 %v2749_v21  ;;  %v2781_v21 = vld [vmem:[%s4122_s5 + $0x8] sm:$0xff] }
  0x5d   :  { %875 = vmatpush.bf16.msra.mxu1 %v2757_v23  ;;  %v2780_v23 = vld [vmem:[%s4122_s5] sm:$0xff] }
  0x5e   :  { %888 = vmatpush.bf16.msra.mxu2 %v2765_v35 }
  0x5f   :  { %901 = vmatpush.bf16.msra.mxu3 %v2773_v43  ;;  %v2788_v43 = vld [vmem:[%s4123_s7] sm:$0xff] }
  0x60   :  { %863 = vmatpush.bf16.msra.mxu0 %v2748_v25  ;;  %v2795_v25 = vld [vmem:[%s4123_s7 + $0x38] sm:$0xff] }
  0x61   :  { %876 = vmatpush.bf16.msra.mxu1 %v2756_v27  ;;  %v2793_v27 = vld [vmem:[%s4123_s7 + $0x28] sm:$0xff] }
  0x62   :  { %889 = vmatpush.bf16.msra.mxu2 %v2764_v40 }
  0x63   :  { %902 = vmatpush.bf16.msra.mxu3 %v2772_v50  ;;  %v2827_v50 = vld [vmem:[%s4125_s9 + $0xf4] sm:$0xf0] }
  0x64   :  { %978 = vmatpush.bf16.msrb.mxu0 %v2787_v15 }
  0x65   :  { %1061 = vmatpush.bf16.msrb.mxu1 %v2795_v25 }
  0x68   :  { %979 = vmatpush.bf16.msrb.mxu0 %v2786_v16 }
  0x69   :  { %1062 = vmatpush.bf16.msrb.mxu1 %v2794_v26 }
  0x6c   :  { %980 = vmatpush.bf16.msrb.mxu0 %v2785_v17  ;;  %v2366_v17 = vld [vmem:[%s4125_s9 + $0x80] sm:$0xf] }
  0x6d   :  { %1063 = vmatpush.bf16.msrb.mxu1 %v2793_v27  ;;  %v2350_v27 = vld [vmem:[%s4125_s9 + $0x60] sm:$0xf] }
  0x70   :  { %981 = vmatpush.bf16.msrb.mxu0 %v2784_v61  ;;  %v2814_v61 = vld [vmem:[%s4125_s9 + $0x8c] sm:$0xf0] }
  0x71   :  { %1064 = vmatpush.bf16.msrb.mxu1 %v2792_v28  ;;  %v2810_v28 = vld [vmem:[%s4125_s9 + $0x6c] sm:$0xf0] }
  0x74   :  { %982 = vmatpush.bf16.msrb.mxu0 %v2783_v62  ;;  %v2812_v62 = vld [vmem:[%s4125_s9 + $0x84] sm:$0xf] }
  0x75   :  { %1065 = vmatpush.bf16.msrb.mxu1 %v2791_v30 }
  0x78   :  { %983 = vmatpush.bf16.msrb.mxu0 %v2782_v19  ;;  %v2368_v19 = vld [vmem:[%s4125_s9 + $0x90] sm:$0xf0] }
  0x79   :  { %1066 = vmatpush.bf16.msrb.mxu1 %v2790_v33  ;;  %v2371_v25 = vor.u32 %v2812_v62, %v2368_v19  ;;  %v2811_v33 = vld [vmem:[%s4125_s9 + $0x74] sm:$0xf0] }
  0x7a   :  { %v2875_v19 = vld [vmem:[%s4126_s11 + $0x174] sm:$0xf0] }
  0x7c   :  { %984 = vmatpush.bf16.msrb.mxu0 %v2781_v21  ;;  %v2815_v21 = vld [vmem:[%s4125_s9 + $0x94] sm:$0xf0] }
  0x80   :  { %985 = vmatpush.bf16.msrb.mxu0 %v2780_v23  ;;  %v2376_v23 = vld [vmem:[%s4125_s9 + $0x98] sm:$0xf0] }
  0xa0   :  { %v464_v41 = vpop.f32.mrf.mxu0 }
  0xa3   :  { %v477_v38 = vpop.f32.mrf.mxu1 }
  0xa4   :  { %v478_v42 = vadd.f32 %v477_v38, %v464_v41 }
  0xa6   :  { %v584_v45 = vadd.f32 %v576_v39, %v478_v42  ;;  %v2789_v42 = vld [vmem:[%s4123_s7 + $0x8] sm:$0xff] }
  0xa7   :  { %v490_v46 = vpop.f32.mrf.mxu2  ;;  %1067 = vmatpush.bf16.msrb.mxu1 %v2789_v42 }
  0xa8   :  { %v588_v49 = vmax.f32 %v584_v45, 0.0  ;;  %v466_v55 = vpop.f32.mrf.mxu0  ;;  %v2826_v45 = vld [vmem:[%s4125_s9 + $0xec] sm:$0xf0] }
  0xa9   :  { %v2398_v55 = vld [vmem:[%s4125_s9 + $0xc0] sm:$0xf] }
  0xaa   :  { %v503_v47 = vpop.f32.mrf.mxu3  ;;  %v592_v53 = vpack.c.bf16 %v588_v49, %v588_v49  ;;  %v2422_v49 = vld [vmem:[%s4125_s9 + $0xe8] sm:$0xf] }
  0xab   :  { %v504_v48 = vadd.f32 %v503_v47, %v490_v46  ;;  %v479_v52 = vpop.f32.mrf.mxu1  ;;  %1068 = vmatpush.bf16.msrb.mxu1 %v2788_v43  ;;  %v2824_v46 = vld [vmem:[%s4125_s9 + $0xe4] sm:$0xf]  ;;  %v2336_v43 = vld [vmem:[%s4125_s9 + $0x50] sm:$0xf0] }
  0xac   :  { %864 = vmatmul.bf16.vlgmr.msra.gmra.mxu0 %v592_v53  ;;  %v2423_v52 = vor.u32 %v2827_v50, %v2422_v49  ;;  %v2825_v53 = vld [vmem:[%s4125_s9 + $0xec] sm:$0xf] }
  0xad   :  { %v585_v51 = vadd.f32 %v577_v44, %v504_v48  ;;  %v2414_v44 = vld [vmem:[%s4125_s9 + $0xe0] sm:$0xf]  ;;  %v2416_v48 = vld [vmem:[%s4125_s9 + $0xf0] sm:$0xf0] }
  0xae   :  { %v2415_v47 = vor.u32 %v2826_v45, %v2414_v44  ;;  %1304 = vmatpush.bf16.msra.mxu0 %v2423_v52  ;;  %v2342_v44 = vld [vmem:[%s4125_s9 + $0x48] sm:$0xf]  ;;  %v2807_v45 = vld [vmem:[%s4125_s9 + $0x54] sm:$0xf0] }
  0xaf   :  { %v589_v54 = vmax.f32 %v585_v51, 0.0  ;;  %v492_v57 = vpop.f32.mrf.mxu2  ;;  %v2419_v51 = vor.u32 %v2824_v46, %v2416_v48  ;;  %v2805_v46 = vld [vmem:[%s4125_s9 + $0x4c] sm:$0xf]  ;;  %v2343_v50 = vor.u32 %v2807_v45, %v2342_v44  ;;  %v2857_v44 = vld [vmem:[%s4126_s11 + $0xe4] sm:$0xf0] }
  0xb0   :  { %1278 = vmatpush.bf16.msrb.mxu2 %v2415_v47  ;;  %v2822_v57 = vld [vmem:[%s4125_s9 + $0xcc] sm:$0xf0]  ;;  %v2344_v47 = vld [vmem:[%s4125_s9 + $0x58] sm:$0xf0] }
  0xb1   :  { %v593_v56 = vpack.c.bf16 %v589_v54, %v589_v54  ;;  %v2424_v54 = vld [vmem:[%s4125_s9 + $0xf8] sm:$0xf0]  ;;  %1291 = vmatpush.bf16.msrb.mxu3 %v2419_v51  ;;  %v2893_v51 = vld [vmem:[%s4121_s6] ss:$0 sm:$0xff]  ;;  %v2347_v52 = vor.u32 %v2805_v46, %v2344_v47 }
  0xb2   :  { %v505_v58 = vpop.f32.mrf.mxu3  ;;  %v2590_v47 = vld [vmem:[%s4126_s11 + $0x140] sm:$0xf] }
  0xb3   :  { %877 = vmatmul.bf16.vlgmr.msra.gmra.mxu1 %v593_v56  ;;  %v2427_v56 = vor.u32 %v2825_v53, %v2424_v54  ;;  %v2820_v58 = vld [vmem:[%s4125_s9 + $0xc4] sm:$0xf] }
  0xb5   :  { %1317 = vmatpush.bf16.msra.mxu1 %v2427_v56 }
  0xc0   :  { %v516_v59 = vpop.f32.mrf.mxu0 }
  0xc1   :  { %v529_v63 = vpop.f32.mrf.mxu1 }
  0xc2   :  { %v530_v0 = vadd.f32 %v529_v63, %v516_v59  ;;  %v2400_v59 = vld [vmem:[%s4125_s9 + $0xd0] sm:$0xf0] }
  0xc3   :  { %v2403_v63 = vor.u32 %v2820_v58, %v2400_v59  ;;  %v2318_v58 = vld [vmem:[%s4125_s9 + $0x20] sm:$0xf]  ;;  %v2802_v59 = vld [vmem:[%s4125_s9 + $0x2c] sm:$0xf0] }
  0xc4   :  { %v586_v1 = vadd.f32 %v578_v60, %v530_v0  ;;  %v2399_v60 = vor.u32 %v2822_v57, %v2398_v55  ;;  %v2406_v0 = vld [vmem:[%s4125_s9 + $0xc8] sm:$0xf] }
  0xc5   :  { %1292 = vmatpush.bf16.msrb.mxu3 %v2403_v63  ;;  %v2319_v63 = vor.u32 %v2802_v59, %v2318_v58  ;;  %v2462_v58 = vld [vmem:[%s4126_s11 + $0x40] sm:$0xf] }
  0xc6   :  { %v590_v2 = vmax.f32 %v586_v1, 0.0  ;;  %v2823_v1 = vld [vmem:[%s4125_s9 + $0xd4] sm:$0xf0]  ;;  %1279 = vmatpush.bf16.msrb.mxu2 %v2399_v60  ;;  %v2800_v60 = vld [vmem:[%s4125_s9 + $0x24] sm:$0xf] }
  0xc8   :  { %v542_v3 = vpop.f32.mrf.mxu2  ;;  %v594_v5 = vpack.c.bf16 %v590_v2, %v590_v2  ;;  %v518_v7 = vpop.f32.mrf.mxu0  ;;  %v2821_v2 = vld [vmem:[%s4125_s9 + $0xcc] sm:$0xf] }
  0xc9   :  { %v555_v6 = vpop.f32.mrf.mxu3  ;;  %v531_v9 = vpop.f32.mrf.mxu1 }
  0xca   :  { %v556_v8 = vadd.f32 %v555_v6, %v542_v3  ;;  %890 = vmatmul.bf16.vlgmr.msra.gmra.mxu2 %v594_v5  ;;  %v2407_v3 = vor.u32 %v2823_v1, %v2406_v0  ;;  %v2382_v5 = vld [vmem:[%s4125_s9 + $0xa0] sm:$0xf]  ;;  %v2818_v6 = vld [vmem:[%s4125_s9 + $0xac] sm:$0xf0]  ;;  %v2384_v9 = vld [vmem:[%s4125_s9 + $0xb0] sm:$0xf0] }
  0xcb   :  { %v2320_v0 = vld [vmem:[%s4125_s9 + $0x30] sm:$0xf0]  ;;  %v2326_v1 = vld [vmem:[%s4125_s9 + $0x28] sm:$0xf] }
  0xcc   :  { %v587_v10 = vadd.f32 %v579_v4, %v556_v8  ;;  %v2408_v4 = vld [vmem:[%s4125_s9 + $0xd8] sm:$0xf0]  ;;  %v2816_v8 = vld [vmem:[%s4125_s9 + $0xa4] sm:$0xf]  ;;  %1305 = vmatpush.bf16.msra.mxu0 %v2407_v3  ;;  %v2323_v3 = vor.u32 %v2800_v60, %v2320_v0  ;;  %v2837_v60 = vld [vmem:[%s4126_s11 + $0x44] sm:$0xf0] }
  0xcd   :  { %v2411_v7 = vor.u32 %v2821_v2, %v2408_v4  ;;  %v2387_v15 = vor.u32 %v2816_v8, %v2384_v9  ;;  %v2803_v2 = vld [vmem:[%s4125_s9 + $0x34] sm:$0xf0]  ;;  %v2302_v8 = vld [vmem:[%s4125_s9] sm:$0xf]  ;;  %v2798_v9 = vld [vmem:[%s4125_s9 + $0xc] sm:$0xf0] }
  0xce   :  { %v591_v11 = vmax.f32 %v587_v10, 0.0  ;;  %v2390_v10 = vld [vmem:[%s4125_s9 + $0xa8] sm:$0xf]  ;;  %v2327_v4 = vor.u32 %v2803_v2, %v2326_v1  ;;  %v2582_v2 = vld [vmem:[%s4126_s11 + $0x130] sm:$0xf] }
  0xcf   :  { %1318 = vmatpush.bf16.msra.mxu1 %v2411_v7  ;;  %1293 = vmatpush.bf16.msrb.mxu3 %v2387_v15  ;;  %v2853_v0 = vld [vmem:[%s4126_s11 + $0xc4] sm:$0xf0] }
  0xd0   :  { %v595_v12 = vpack.c.bf16 %v591_v11, %v591_v11  ;;  %v544_v13 = vpop.f32.mrf.mxu2  ;;  %v2383_v11 = vor.u32 %v2818_v6, %v2382_v5  ;;  %v2801_v5 = vld [vmem:[%s4125_s9 + $0x2c] sm:$0xf]  ;;  %v2328_v6 = vld [vmem:[%s4125_s9 + $0x38] sm:$0xf0] }
  0xd1   :  { %v557_v14 = vpop.f32.mrf.mxu3  ;;  %v2817_v13 = vld [vmem:[%s4125_s9 + $0xac] sm:$0xf]  ;;  %v2331_v7 = vor.u32 %v2801_v5, %v2328_v6  ;;  %v2883_v5 = vld [vmem:[%s4126_s11 + $0x1b4] sm:$0xf0]  ;;  %v2463_v6 = vor.u32 %v2837_v60, %v2462_v58  ;;  %v2488_v58 = vld [vmem:[%s4126_s11 + $0x78] sm:$0xf0] }
  0xd2   :  { %903 = vmatmul.bf16.vlgmr.msra.gmra.mxu3 %v595_v12  ;;  %v2819_v12 = vld [vmem:[%s4125_s9 + $0xb4] sm:$0xf0]  ;;  %v2392_v14 = vld [vmem:[%s4125_s9 + $0xb8] sm:$0xf0]  ;;  %1280 = vmatpush.bf16.msrb.mxu2 %v2383_v11  ;;  %v2303_v11 = vor.u32 %v2798_v9, %v2302_v8  ;;  %v2454_v8 = vld [vmem:[%s4126_s11 + $0x30] sm:$0xf] }
  0xd3   :  { %v2391_v16 = vor.u32 %v2819_v12, %v2390_v10  ;;  %1294 = vmatpush.bf16.msrb.mxu3 %v2371_v25  ;;  %v2796_v10 = vld [vmem:[%s4125_s9 + $0x4] sm:$0xf]  ;;  %v2304_v12 = vld [vmem:[%s4125_s9 + $0x10] sm:$0xf0]  ;;  %v2552_v60 = vld [vmem:[%s4126_s11 + $0xf8] sm:$0xf0] }
  0xd4   :  { %v2307_v15 = vor.u32 %v2796_v10, %v2304_v12  ;;  %v2835_v10 = vld [vmem:[%s4126_s11 + $0x34] sm:$0xf0] }
  0xd5   :  { %1306 = vmatpush.bf16.msra.mxu0 %v2391_v16  ;;  %v2851_v12 = vld [vmem:[%s4126_s11 + $0xb4] sm:$0xf0] }
 0x129   :  { %v865_v18 = vpop.f32.mrf.mxu0 }
 0x12a   :  { %v866_v31 = vadd.f32 %v2892_v29, %v865_v18  ;;  %v2395_v18 = vor.u32 %v2817_v13, %v2392_v14  ;;  %v2808_v29 = vld [vmem:[%s4125_s9 + $0x64] sm:$0xf]  ;;  %v2310_v13 = vld [vmem:[%s4125_s9 + $0x8] sm:$0xf]  ;;  %v2799_v14 = vld [vmem:[%s4125_s9 + $0x14] sm:$0xf0] }
 0x12b   :  { %v2311_v16 = vor.u32 %v2799_v14, %v2310_v13  ;;  %v2574_v14 = vld [vmem:[%s4126_s11 + $0x120] sm:$0xf] }
 0x12c   :  { %1319 = vmatpush.bf16.msra.mxu1 %v2395_v18  ;;  %v2614_v18 = vld [vmem:[%s4126_s11 + $0x170] sm:$0xf] }
 0x130   :  { %v878_v20 = vpop.f32.mrf.mxu1 }
 0x131   :  { %v867_v22 = vpop.f32.mrf.mxu0  ;;  %v879_v34 = vadd.f32 %v878_v20, %v866_v31  ;;  %v2374_v20 = vld [vmem:[%s4125_s9 + $0x88] sm:$0xf]  ;;  %v2352_v31 = vld [vmem:[%s4125_s9 + $0x70] sm:$0xf0] }
 0x132   :  { %v2813_v22 = vld [vmem:[%s4125_s9 + $0x8c] sm:$0xf]  ;;  %v2375_v26 = vor.u32 %v2815_v21, %v2374_v20  ;;  %v2678_v20 = vld [vmem:[%s4126_s11 + $0x1f0] sm:$0xf]  ;;  %v2615_v21 = vor.u32 %v2875_v19, %v2614_v18  ;;  %v2446_v18 = vld [vmem:[%s4126_s11 + $0x20] sm:$0xf] }
 0x133   :  { %v2379_v30 = vor.u32 %v2813_v22, %v2376_v23  ;;  %v2891_v22 = vld [vmem:[%s4126_s11 + $0x1f4] sm:$0xf0]  ;;  %v2606_v23 = vld [vmem:[%s4126_s11 + $0x160] sm:$0xf] }
 0x134   :  { %1307 = vmatpush.bf16.msra.mxu0 %v2375_v26  ;;  %v2679_v25 = vor.u32 %v2891_v22, %v2678_v20  ;;  %v2670_v26 = vld [vmem:[%s4126_s11 + $0x1e0] sm:$0xf]  ;;  %v2833_v20 = vld [vmem:[%s4126_s11 + $0x24] sm:$0xf0] }
 0x135   :  { %1320 = vmatpush.bf16.msra.mxu1 %v2379_v30  ;;  %v2843_v30 = vld [vmem:[%s4126_s11 + $0x74] sm:$0xf0]  ;;  %v2849_v22 = vld [vmem:[%s4126_s11 + $0xa4] sm:$0xf0] }
 0x138   :  { %v880_v24 = vpop.f32.mrf.mxu1 }
 0x139   :  { %v2367_v24 = vor.u32 %v2814_v61, %v2366_v17  ;;  %v2797_v17 = vld [vmem:[%s4125_s9 + $0xc] sm:$0xf]  ;;  %v2312_v61 = vld [vmem:[%s4125_s9 + $0x18] sm:$0xf0] }
 0x13a   :  { %v2315_v62 = vor.u32 %v2797_v17, %v2312_v61  ;;  %v2881_v17 = vld [vmem:[%s4126_s11 + $0x1a4] sm:$0xf0]  ;;  %v2455_v61 = vor.u32 %v2835_v10, %v2454_v8 }
 0x13b   :  { %1281 = vmatpush.bf16.msrb.mxu2 %v2367_v24  ;;  %v2873_v24 = vld [vmem:[%s4126_s11 + $0x164] sm:$0xf0] }
 0x14d   :  { %v891_v32 = vpop.f32.mrf.mxu2 }
 0x14e   :  { %v892_v35 = vadd.f32 %v891_v32, %v879_v34  ;;  %v2358_v32 = vld [vmem:[%s4125_s9 + $0x68] sm:$0xf]  ;;  %v2809_v34 = vld [vmem:[%s4125_s9 + $0x6c] sm:$0xf] }
 0x155   :  { %v904_v36 = vpop.f32.mrf.mxu3  ;;  %v893_v38 = vpop.f32.mrf.mxu2 }
 0x156   :  { %v905_v37 = vadd.f32 %v904_v36, %v892_v35  ;;  %v2360_v35 = vld [vmem:[%s4125_s9 + $0x78] sm:$0xf0]  ;;  %v2351_v36 = vor.u32 %v2810_v28, %v2350_v27  ;;  %v2359_v38 = vor.u32 %v2811_v33, %v2358_v32  ;;  %v2889_v27 = vld [vmem:[%s4126_s11 + $0x1e4] sm:$0xf0]  ;;  %v2486_v28 = vld [vmem:[%s4126_s11 + $0x70] sm:$0xf] }
 0x157   :  { %v2363_v42 = vor.u32 %v2809_v34, %v2360_v35  ;;  %v2859_v32 = vld [vmem:[%s4126_s11 + $0xf4] sm:$0xf0]  ;;  %v2671_v33 = vor.u32 %v2889_v27, %v2670_v26  ;;  %v2487_v34 = vor.u32 %v2843_v30, %v2486_v28  ;;  %v2894_v26 = vld [vmem:[%s4124_s8] ss:$0 sm:$0xff]  ;;  %v2630_v27 = vld [vmem:[%s4126_s11 + $0x190] sm:$0xf] }
 0x158   :  { %v908_v39 = vmax.f32 %v905_v37, 0.0  ;;  %v2355_v37 = vor.u32 %v2808_v29, %v2352_v31  ;;  %1282 = vmatpush.bf16.msrb.mxu2 %v2351_v36  ;;  %1308 = vmatpush.bf16.msra.mxu0 %v2359_v38  ;;  %v2607_v29 = vor.u32 %v2873_v24, %v2606_v23  ;;  %v2550_v31 = vld [vmem:[%s4126_s11 + $0xf0] sm:$0xf]  ;;  %v2879_v28 = vld [vmem:[%s4126_s11 + $0x194] sm:$0xf0] }
 0x159   :  { %1321 = vmatpush.bf16.msra.mxu1 %v2363_v42  ;;  %v2551_v35 = vor.u32 %v2859_v32, %v2550_v31  ;;  %v2598_v36 = vld [vmem:[%s4126_s11 + $0x150] sm:$0xf] }
 0x15a   :  { %v909_v40 = vpack.c.bf16 %v908_v39, %v908_v39  ;;  %v2334_v39 = vld [vmem:[%s4125_s9 + $0x40] sm:$0xf]  ;;  %1295 = vmatpush.bf16.msrb.mxu3 %v2355_v37  ;;  %v2871_v37 = vld [vmem:[%s4126_s11 + $0x154] sm:$0xf0]  ;;  %v2662_v38 = vld [vmem:[%s4126_s11 + $0x1d0] sm:$0xf] }
 0x15b   :  { %v2599_v45 = vor.u32 %v2871_v37, %v2598_v36  ;;  %v2566_v24 = vld [vmem:[%s4126_s11 + $0x110] sm:$0xf]  ;;  %v2631_v37 = vor.u32 %v2879_v28, %v2630_v27  ;;  %v2838_v28 = vld [vmem:[%s4126_s11 + $0x54] sm:$0xf] }
 0x15c   :  { %986 = vmatmul.bf16.vlgmr.msrb.gmra.mxu0 %v909_v40  ;;  %v2806_v40 = vld [vmem:[%s4125_s9 + $0x4c] sm:$0xf0] }
 0x15d   :  { %v906_v41 = vpop.f32.mrf.mxu3  ;;  %v2335_v48 = vor.u32 %v2806_v40, %v2334_v39  ;;  %1309 = vmatpush.bf16.msra.mxu0 %v2343_v50  ;;  %1322 = vmatpush.bf16.msra.mxu1 %v2347_v52  ;;  %v2887_v39 = vld [vmem:[%s4126_s11 + $0x1d4] sm:$0xf0]  ;;  %v2478_v40 = vld [vmem:[%s4126_s11 + $0x60] sm:$0xf]  ;;  %v2470_v50 = vld [vmem:[%s4126_s11 + $0x50] sm:$0xf] }
 0x15e   :  { %v2804_v41 = vld [vmem:[%s4125_s9 + $0x44] sm:$0xf]  ;;  %v2534_v52 = vld [vmem:[%s4126_s11 + $0xd0] sm:$0xf] }
 0x15f   :  { %v2339_v49 = vor.u32 %v2804_v41, %v2336_v43  ;;  %1283 = vmatpush.bf16.msrb.mxu2 %v2335_v48  ;;  %v2841_v41 = vld [vmem:[%s4126_s11 + $0x64] sm:$0xf0]  ;;  %v2542_v43 = vld [vmem:[%s4126_s11 + $0xe0] sm:$0xf]  ;;  %v2438_v31 = vld [vmem:[%s4126_s11 + $0x10] sm:$0xf] }
 0x160   :  { %v2479_v42 = vor.u32 %v2841_v41, %v2478_v40  ;;  %v2543_v46 = vor.u32 %v2857_v44, %v2542_v43  ;;  %v2869_v48 = vld [vmem:[%s4126_s11 + $0x144] sm:$0xf0]  ;;  %v2622_v41 = vld [vmem:[%s4126_s11 + $0x180] sm:$0xf]  ;;  %v2874_v43 = vld [vmem:[%s4126_s11 + $0x174] sm:$0xf] }
 0x161   :  { %1296 = vmatpush.bf16.msrb.mxu3 %v2339_v49  ;;  %1310 = vmatpush.bf16.msra.mxu0 %v2327_v4  ;;  %v2663_v49 = vor.u32 %v2887_v39, %v2662_v38  ;;  %v2591_v59 = vor.u32 %v2869_v48, %v2590_v47  ;;  %v2646_v4 = vld [vmem:[%s4126_s11 + $0x1b0] sm:$0xf]  ;;  %v2558_v38 = vld [vmem:[%s4126_s11 + $0x100] sm:$0xf]  ;;  %v2861_v39 = vld [vmem:[%s4126_s11 + $0x104] sm:$0xf0] }
 0x162   :  { %1323 = vmatpush.bf16.msra.mxu1 %v2331_v7  ;;  %v2647_v13 = vor.u32 %v2883_v5, %v2646_v4  ;;  %v2616_v44 = vld [vmem:[%s4126_s11 + $0x178] sm:$0xf0]  ;;  %v2672_v4 = vld [vmem:[%s4126_s11 + $0x1e8] sm:$0xf0] }
 0x163   :  { %1284 = vmatpush.bf16.msrb.mxu2 %v2319_v63  ;;  %v2526_v63 = vld [vmem:[%s4126_s11 + $0xc0] sm:$0xf] }
 0x164   :  { %v2527_v7 = vor.u32 %v2853_v0, %v2526_v63  ;;  %v2619_v63 = vor.u32 %v2874_v43, %v2616_v44  ;;  %v2528_v44 = vld [vmem:[%s4126_s11 + $0xc8] sm:$0xf0] }
 0x165   :  { %1297 = vmatpush.bf16.msrb.mxu3 %v2323_v3  ;;  %1311 = vmatpush.bf16.msra.mxu0 %v2311_v16  ;;  %v2867_v3 = vld [vmem:[%s4126_s11 + $0x134] sm:$0xf0]  ;;  %v2638_v16 = vld [vmem:[%s4126_s11 + $0x1a0] sm:$0xf] }
 0x166   :  { %1324 = vmatpush.bf16.msra.mxu1 %v2315_v62  ;;  %v2583_v9 = vor.u32 %v2867_v3, %v2582_v2  ;;  %v2639_v23 = vor.u32 %v2881_v17, %v2638_v16  ;;  %v2608_v2 = vld [vmem:[%s4126_s11 + $0x168] sm:$0xf0]  ;;  %v2888_v3 = vld [vmem:[%s4126_s11 + $0x1e4] sm:$0xf]  ;;  %v2664_v16 = vld [vmem:[%s4126_s11 + $0x1d8] sm:$0xf0] }
 0x167   :  { %1285 = vmatpush.bf16.msrb.mxu2 %v2303_v11  ;;  %v2518_v11 = vld [vmem:[%s4126_s11 + $0xb0] sm:$0xf] }
 0x168   :  { %v2519_v62 = vor.u32 %v2851_v12, %v2518_v11  ;;  %v2675_v11 = vor.u32 %v2888_v3, %v2672_v4  ;;  %v2870_v12 = vld [vmem:[%s4126_s11 + $0x154] sm:$0xf] }
 0x169   :  { %1298 = vmatpush.bf16.msrb.mxu3 %v2307_v15  ;;  %1754 = vmatpush.bf16.msrb.mxu0 %v2615_v21  ;;  %v2865_v15 = vld [vmem:[%s4126_s11 + $0x124] sm:$0xf0]  ;;  %v2510_v21 = vld [vmem:[%s4126_s11 + $0xa0] sm:$0xf] }
 0x16a   :  { %v2575_v19 = vor.u32 %v2865_v15, %v2574_v14  ;;  %v2511_v30 = vor.u32 %v2849_v22, %v2510_v21  ;;  %v2886_v14 = vld [vmem:[%s4126_s11 + $0x1d4] sm:$0xf]  ;;  %v2868_v22 = vld [vmem:[%s4126_s11 + $0x144] sm:$0xf] }
 0x16b   :  { %1728 = vmatpush.bf16.msra.mxu2 %v2487_v34  ;;  %v2502_v34 = vld [vmem:[%s4126_s11 + $0x90] sm:$0xf]  ;;  %v2667_v17 = vor.u32 %v2886_v14, %v2664_v16  ;;  %v2830_v14 = vld [vmem:[%s4126_s11 + $0x14] sm:$0xf] }
 0x16c   :  { %v2846_v16 = vld [vmem:[%s4126_s11 + $0x94] sm:$0xf] }
 0x16d   :  { %1741 = vmatpush.bf16.msra.mxu3 %v2551_v35  ;;  %1755 = vmatpush.bf16.msrb.mxu0 %v2607_v29  ;;  %v2447_v29 = vor.u32 %v2833_v20, %v2446_v18  ;;  %v2847_v35 = vld [vmem:[%s4126_s11 + $0x94] sm:$0xf0]  ;;  %v2544_v20 = vld [vmem:[%s4126_s11 + $0xe8] sm:$0xf0] }
 0x16e   :  { %v2503_v48 = vor.u32 %v2847_v35, %v2502_v34  ;;  %v2866_v34 = vld [vmem:[%s4126_s11 + $0x134] sm:$0xf]  ;;  %v2584_v35 = vld [vmem:[%s4126_s11 + $0x138] sm:$0xf0] }
 0x16f   :  { %1729 = vmatpush.bf16.msra.mxu2 %v2479_v42  ;;  %v2877_v42 = vld [vmem:[%s4126_s11 + $0x184] sm:$0xf0] }
 0x171   :  { %1742 = vmatpush.bf16.msra.mxu3 %v2543_v46  ;;  %1756 = vmatpush.bf16.msrb.mxu0 %v2599_v45  ;;  %v2890_v45 = vld [vmem:[%s4126_s11 + $0x1f4] sm:$0xf]  ;;  %v2680_v46 = vld [vmem:[%s4126_s11 + $0x1f8] sm:$0xf0] }
 0x172   :  { %v2683_v0 = vor.u32 %v2890_v45, %v2680_v46  ;;  %v2864_v46 = vld [vmem:[%s4126_s11 + $0x124] sm:$0xf] }
 0x175   :  { %1757 = vmatpush.bf16.msrb.mxu0 %v2591_v59  ;;  %v2858_v59 = vld [vmem:[%s4126_s11 + $0xf4] sm:$0xf] }
 0x179   :  { %1758 = vmatpush.bf16.msrb.mxu0 %v2583_v9  ;;  %v2555_v9 = vor.u32 %v2858_v59, %v2552_v60  ;;  %v2568_v59 = vld [vmem:[%s4126_s11 + $0x118] sm:$0xf0]  ;;  %v2878_v60 = vld [vmem:[%s4126_s11 + $0x194] sm:$0xf] }
 0x17d   :  { %1759 = vmatpush.bf16.msrb.mxu0 %v2575_v19  ;;  %v2856_v19 = vld [vmem:[%s4126_s11 + $0xe4] sm:$0xf] }
 0x17e   :  { %v2547_v21 = vor.u32 %v2856_v19, %v2544_v20  ;;  %v2432_v19 = vld [vmem:[%s4126_s11 + $0x8] sm:$0xf0]  ;;  %v2844_v20 = vld [vmem:[%s4126_s11 + $0x84] sm:$0xf] }
 0x1d9   :  { %v987_v53 = vpop.f32.mrf.mxu0 }
 0x1da   :  { %v988_v54 = vadd.f32 %v2893_v51, %v987_v53  ;;  %v2839_v51 = vld [vmem:[%s4126_s11 + $0x54] sm:$0xf0]  ;;  %v2654_v53 = vld [vmem:[%s4126_s11 + $0x1c0] sm:$0xf] }
 0x1dc   :  { %v991_v55 = vmax.f32 %v988_v54, 0.0  ;;  %v2885_v54 = vld [vmem:[%s4126_s11 + $0x1c4] sm:$0xf0] }
 0x1dd   :  { %v2655_v1 = vor.u32 %v2885_v54, %v2654_v53  ;;  %v2845_v53 = vld [vmem:[%s4126_s11 + $0x84] sm:$0xf0]  ;;  %v2842_v54 = vld [vmem:[%s4126_s11 + $0x74] sm:$0xf] }
 0x1de   :  { %v992_v56 = vpack.c.bf16 %v991_v55, %v991_v55  ;;  %v2855_v55 = vld [vmem:[%s4126_s11 + $0xd4] sm:$0xf0]  ;;  %v2491_v8 = vor.u32 %v2842_v54, %v2488_v58  ;;  %v2850_v54 = vld [vmem:[%s4126_s11 + $0xb4] sm:$0xf] }
 0x1df   :  { %v2862_v58 = vld [vmem:[%s4126_s11 + $0x114] sm:$0xf] }
 0x1e0   :  { %1069 = vmatmul.bf16.vlgmr.msrb.gmra.mxu1 %v992_v56  ;;  %v2471_v56 = vor.u32 %v2839_v51, %v2470_v50  ;;  %v2430_v50 = vld [vmem:[%s4126_s11] sm:$0xf]  ;;  %v2829_v51 = vld [vmem:[%s4126_s11 + $0x4] sm:$0xf0] }
 0x1e1   :  { %v989_v57 = vpop.f32.mrf.mxu0  ;;  %1767 = vmatpush.bf16.msrb.mxu1 %v2679_v25  ;;  %v2863_v25 = vld [vmem:[%s4126_s11 + $0x114] sm:$0xf0]  ;;  %v2431_v5 = vor.u32 %v2829_v51, %v2430_v50  ;;  %v2640_v50 = vld [vmem:[%s4126_s11 + $0x1a8] sm:$0xf0] }
 0x1e2   :  { %v2535_v57 = vor.u32 %v2855_v55, %v2534_v52  ;;  %1730 = vmatpush.bf16.msra.mxu2 %v2471_v56  ;;  %v2567_v32 = vor.u32 %v2863_v25, %v2566_v24  ;;  %v2494_v52 = vld [vmem:[%s4126_s11 + $0x80] sm:$0xf]  ;;  %v2559_v56 = vor.u32 %v2861_v39, %v2558_v38  ;;  %v2884_v24 = vld [vmem:[%s4126_s11 + $0x1c4] sm:$0xf]  ;;  %v2648_v38 = vld [vmem:[%s4126_s11 + $0x1b8] sm:$0xf0] }
 0x1e4   :  { %1743 = vmatpush.bf16.msra.mxu3 %v2535_v57  ;;  %1760 = vmatpush.bf16.msrb.mxu0 %v2567_v32  ;;  %v2623_v57 = vor.u32 %v2877_v42, %v2622_v41  ;;  %v2536_v32 = vld [vmem:[%s4126_s11 + $0xd8] sm:$0xf0]  ;;  %v2464_v41 = vld [vmem:[%s4126_s11 + $0x48] sm:$0xf0]  ;;  %v2852_v42 = vld [vmem:[%s4126_s11 + $0xc4] sm:$0xf] }
 0x1e5   :  { %1768 = vmatpush.bf16.msrb.mxu1 %v2671_v33  ;;  %v2831_v33 = vld [vmem:[%s4126_s11 + $0x14] sm:$0xf0]  ;;  %v2531_v45 = vor.u32 %v2852_v42, %v2528_v44 }
 0x1e6   :  { %1731 = vmatpush.bf16.msra.mxu2 %v2463_v6  ;;  %v2439_v47 = vor.u32 %v2831_v33, %v2438_v31  ;;  %v2495_v6 = vor.u32 %v2845_v53, %v2494_v52  ;;  %v2834_v52 = vld [vmem:[%s4126_s11 + $0x34] sm:$0xf]  ;;  %v2456_v53 = vld [vmem:[%s4126_s11 + $0x38] sm:$0xf0] }
 0x1e8   :  { %1744 = vmatpush.bf16.msra.mxu3 %v2527_v7  ;;  %1761 = vmatpush.bf16.msrb.mxu0 %v2559_v56  ;;  %v2520_v56 = vld [vmem:[%s4126_s11 + $0xb8] sm:$0xf0] }
 0x1e9   :  { %1769 = vmatpush.bf16.msrb.mxu1 %v2663_v49 }
 0x1ea   :  { %1732 = vmatpush.bf16.msra.mxu2 %v2455_v61  ;;  %v2840_v61 = vld [vmem:[%s4126_s11 + $0x64] sm:$0xf] }
 0x1ec   :  { %1745 = vmatpush.bf16.msra.mxu3 %v2519_v62  ;;  %v2480_v62 = vld [vmem:[%s4126_s11 + $0x68] sm:$0xf0] }
 0x1ed   :  { %1770 = vmatpush.bf16.msrb.mxu1 %v2655_v1  ;;  %v2872_v1 = vld [vmem:[%s4126_s11 + $0x164] sm:$0xf]  ;;  %v2483_v18 = vor.u32 %v2840_v61, %v2480_v62  ;;  %v2504_v61 = vld [vmem:[%s4126_s11 + $0x98] sm:$0xf0] }
 0x1ee   :  { %1733 = vmatpush.bf16.msra.mxu2 %v2447_v29  ;;  %v2611_v10 = vor.u32 %v2872_v1, %v2608_v2  ;;  %v2472_v29 = vld [vmem:[%s4126_s11 + $0x58] sm:$0xf0]  ;;  %v2832_v1 = vld [vmem:[%s4126_s11 + $0x24] sm:$0xf]  ;;  %v2448_v2 = vld [vmem:[%s4126_s11 + $0x28] sm:$0xf0]  ;;  %v2507_v62 = vor.u32 %v2846_v16, %v2504_v61 }
 0x1ef   :  { %v2475_v31 = vor.u32 %v2838_v28, %v2472_v29  ;;  %v2451_v4 = vor.u32 %v2832_v1, %v2448_v2 }
 0x1f0   :  { %1746 = vmatpush.bf16.msra.mxu3 %v2511_v30  ;;  %v2854_v30 = vld [vmem:[%s4126_s11 + $0xd4] sm:$0xf] }
 0x1f1   :  { %1771 = vmatpush.bf16.msrb.mxu1 %v2647_v13  ;;  %v2600_v13 = vld [vmem:[%s4126_s11 + $0x158] sm:$0xf0]  ;;  %v2539_v33 = vor.u32 %v2854_v30, %v2536_v32 }
 0x1f2   :  { %1734 = vmatpush.bf16.msra.mxu2 %v2439_v47  ;;  %v2603_v15 = vor.u32 %v2870_v12, %v2600_v13  ;;  %v2576_v47 = vld [vmem:[%s4126_s11 + $0x128] sm:$0xf0] }
 0x1f4   :  { %1747 = vmatpush.bf16.msra.mxu3 %v2503_v48  ;;  %v2880_v48 = vld [vmem:[%s4126_s11 + $0x1a4] sm:$0xf] }
 0x1f5   :  { %1772 = vmatpush.bf16.msrb.mxu1 %v2639_v23  ;;  %v2592_v23 = vld [vmem:[%s4126_s11 + $0x148] sm:$0xf0]  ;;  %v2643_v51 = vor.u32 %v2880_v48, %v2640_v50 }
 0x1f6   :  { %1735 = vmatpush.bf16.msra.mxu2 %v2431_v5  ;;  %v2595_v25 = vor.u32 %v2868_v22, %v2592_v23  ;;  %v2848_v5 = vld [vmem:[%s4126_s11 + $0xa4] sm:$0xf]  ;;  %v2496_v22 = vld [vmem:[%s4126_s11 + $0x88] sm:$0xf0] }
 0x1f7   :  { %v2499_v23 = vor.u32 %v2844_v20, %v2496_v22 }
 0x1f8   :  { %1748 = vmatpush.bf16.msra.mxu3 %v2495_v6  ;;  %v2512_v6 = vld [vmem:[%s4126_s11 + $0xa8] sm:$0xf0] }
 0x1f9   :  { %1773 = vmatpush.bf16.msrb.mxu1 %v2631_v37  ;;  %v2882_v37 = vld [vmem:[%s4126_s11 + $0x1b4] sm:$0xf] }
 0x1fa   :  { %v2651_v39 = vor.u32 %v2882_v37, %v2648_v38 }
 0x1fd   :  { %1774 = vmatpush.bf16.msrb.mxu1 %v2623_v57  ;;  %v2523_v57 = vor.u32 %v2850_v54, %v2520_v56 }
 0x25d   :  { %v1070_v36 = vpop.f32.mrf.mxu1 }
 0x25e   :  { %v1071_v40 = vadd.f32 %v2894_v26, %v1070_v36  ;;  %v2656_v26 = vld [vmem:[%s4126_s11 + $0x1c8] sm:$0xf0]  ;;  %v2587_v36 = vor.u32 %v2866_v34, %v2584_v35 }
 0x25f   :  { %v2659_v27 = vor.u32 %v2884_v24, %v2656_v26  ;;  %v1108_v24 = vld [vmem:[%s4127_s10] sm:$0xf] }
 0x260   :  { %v1074_v49 = vmax.f32 %v1071_v40, 0.0  ;;  %v2836_v40 = vld [vmem:[%s4126_s11 + $0x44] sm:$0xf]  ;;  %v1113_v26 = vperm.slane %v1108_v24, 3  ;;  %v1111_v32 = vperm.slane %v1108_v24, 1 }
 0x261   :  { %v2467_v43 = vor.u32 %v2836_v40, %v2464_v41 }
 0x262   :  { %v1075_v55 = vpack.c.bf16 %v1074_v49, %v1074_v49  ;;  %v2579_v49 = vor.u32 %v2864_v46, %v2576_v47 }
 0x264   :  { %1286 = vmatmul.bf16.vlgmr.msrb.gmra.mxu2 %v1075_v55  ;;  %1299 = vmatmul.bf16.vlgmr.msrb.gmra.mxu3 %v1075_v55 }
 0x265   :  { %1312 = vmatmul.bf16.vlgmr.msra.gmra.mxu0 %v1075_v55  ;;  %1325 = vmatmul.bf16.vlgmr.msra.gmra.mxu1 %v1075_v55  ;;  %v1072_v7 = vpop.f32.mrf.mxu1  ;;  %v2459_v55 = vor.u32 %v2834_v52, %v2456_v53 }
 0x266   :  { %1806 = vmatpush.bf16.msra.mxu0 %v2619_v63  ;;  %1819 = vmatpush.bf16.msra.mxu1 %v2683_v0  ;;  %v2571_v63 = vor.u32 %v2862_v58, %v2568_v59  ;;  %v2632_v0 = vld [vmem:[%s4126_s11 + $0x198] sm:$0xf0]  ;;  %v2860_v7 = vld [vmem:[%s4126_s11 + $0x104] sm:$0xf] }
 0x267   :  { %1780 = vmatpush.bf16.msrb.mxu2 %v2491_v8  ;;  %1793 = vmatpush.bf16.msrb.mxu3 %v2555_v9  ;;  %v2635_v3 = vor.u32 %v2878_v60, %v2632_v0  ;;  %v2515_v8 = vor.u32 %v2848_v5, %v2512_v6  ;;  %v2560_v9 = vld [vmem:[%s4126_s11 + $0x108] sm:$0xf0] }
 0x268   :  { %v2563_v12 = vor.u32 %v2860_v7, %v2560_v9 }
 0x26a   :  { %1807 = vmatpush.bf16.msra.mxu0 %v2611_v10  ;;  %1820 = vmatpush.bf16.msra.mxu1 %v2675_v11  ;;  %v2876_v10 = vld [vmem:[%s4126_s11 + $0x184] sm:$0xf]  ;;  %v2624_v11 = vld [vmem:[%s4126_s11 + $0x188] sm:$0xf0] }
 0x26b   :  { %1781 = vmatpush.bf16.msrb.mxu2 %v2483_v18  ;;  %1794 = vmatpush.bf16.msrb.mxu3 %v2547_v21  ;;  %v2627_v13 = vor.u32 %v2876_v10, %v2624_v11  ;;  %v2828_v18 = vld [vmem:[%s4126_s11 + $0x4] sm:$0xf] }
 0x26c   :  { %v2435_v21 = vor.u32 %v2828_v18, %v2432_v19 }
 0x26e   :  { %1808 = vmatpush.bf16.msra.mxu0 %v2603_v15  ;;  %1821 = vmatpush.bf16.msra.mxu1 %v2667_v17  ;;  %v2440_v15 = vld [vmem:[%s4126_s11 + $0x18] sm:$0xf0] }
 0x26f   :  { %1782 = vmatpush.bf16.msrb.mxu2 %v2475_v31  ;;  %1795 = vmatpush.bf16.msrb.mxu3 %v2539_v33  ;;  %v2443_v17 = vor.u32 %v2830_v14, %v2440_v15  ;;  %v1110_v31 = vperm.slane %v1108_v24, 0 }
 0x272   :  { %1809 = vmatpush.bf16.msra.mxu0 %v2595_v25  ;;  %1822 = vmatpush.bf16.msra.mxu1 %v2659_v27  ;;  %v1112_v25 = vperm.slane %v1108_v24, 2 }
 0x273   :  { %1783 = vmatpush.bf16.msrb.mxu2 %v2467_v43  ;;  %1796 = vmatpush.bf16.msrb.mxu3 %v2531_v45 }
 0x276   :  { %1810 = vmatpush.bf16.msra.mxu0 %v2587_v36  ;;  %1823 = vmatpush.bf16.msra.mxu1 %v2651_v39 }
 0x277   :  { %1784 = vmatpush.bf16.msrb.mxu2 %v2459_v55  ;;  %1797 = vmatpush.bf16.msrb.mxu3 %v2523_v57 }
 0x27a   :  { %1811 = vmatpush.bf16.msra.mxu0 %v2579_v49  ;;  %1824 = vmatpush.bf16.msra.mxu1 %v2643_v51  ;;  %v1402_v51 = vld [vmem:[%s4128_s12] sm:$0x3] }
 0x27b   :  { %1785 = vmatpush.bf16.msrb.mxu2 %v2451_v4  ;;  %1798 = vmatpush.bf16.msrb.mxu3 %v2515_v8  ;;  %v1404_v54 = vperm.slane %v1402_v51, 0  ;;  %v1405_v7 = vperm.slane %v1402_v51, 1 }
 0x27e   :  { %1812 = vmatpush.bf16.msra.mxu0 %v2571_v63  ;;  %1825 = vmatpush.bf16.msra.mxu1 %v2635_v3 }
 0x27f   :  { %1786 = vmatpush.bf16.msrb.mxu2 %v2443_v17  ;;  %1799 = vmatpush.bf16.msrb.mxu3 %v2507_v62 }
 0x282   :  { %1813 = vmatpush.bf16.msra.mxu0 %v2563_v12  ;;  %1826 = vmatpush.bf16.msra.mxu1 %v2627_v13 }
 0x283   :  { %1787 = vmatpush.bf16.msrb.mxu2 %v2435_v21  ;;  %1800 = vmatpush.bf16.msrb.mxu3 %v2499_v23 }
 0x2e2   :  { %v1313_v27 = vpop.f32.mrf.mxu0  ;;  %v1326_v28 = vpop.f32.mrf.mxu1 }
 0x2e3   :  { %v1314_v29 = vadd.f32 %v1313_v27, %v1112_v25  ;;  %v1327_v30 = vadd.f32 %v1326_v28, %v1113_v26 }
 0x2e5   :  { %v1332_v33 = vmax.f32 %v1314_v29, 0.0  ;;  %v1333_v34 = vmax.f32 %v1327_v30, 0.0 }
 0x2e7   :  { %v1336_v35 = vpack.c.bf16 %v1332_v33, %v1332_v33  ;;  %v1337_v36 = vpack.c.bf16 %v1333_v34, %v1333_v34  ;;  %v1287_v37 = vpop.f32.mrf.mxu2  ;;  %v1300_v38 = vpop.f32.mrf.mxu3 }
 0x2e8   :  { %v1288_v39 = vadd.f32 %v1287_v37, %v1110_v31  ;;  %v1301_v40 = vadd.f32 %v1300_v38, %v1111_v32 }
 0x2e9   :  { %1762 = vmatmul.bf16.vlgmr.msrb.gmra.mxu0 %v1336_v35  ;;  %1775 = vmatmul.bf16.vlgmr.msrb.gmra.mxu1 %v1337_v36 }
 0x2ea   :  { %v1330_v41 = vmax.f32 %v1288_v39, 0.0  ;;  %v1331_v42 = vmax.f32 %v1301_v40, 0.0  ;;  %v1315_v43 = vpop.f32.mrf.mxu0  ;;  %v1328_v44 = vpop.f32.mrf.mxu1 }
 0x2ec   :  { %v1334_v45 = vpack.c.bf16 %v1330_v41, %v1330_v41  ;;  %v1335_v46 = vpack.c.bf16 %v1331_v42, %v1331_v42 }
 0x2ee   :  { %1736 = vmatmul.bf16.vlgmr.msra.gmra.mxu2 %v1334_v45  ;;  %1749 = vmatmul.bf16.vlgmr.msra.gmra.mxu3 %v1335_v46 }
 0x2ef   :  { %v1289_v47 = vpop.f32.mrf.mxu2  ;;  %v1302_v48 = vpop.f32.mrf.mxu3 }
 0x2f9   :  { %1814 = vmatmul.bf16.vlgmr.msra.gmra.mxu0 %v1336_v35  ;;  %1827 = vmatmul.bf16.vlgmr.msra.gmra.mxu1 %v1337_v36 }
 0x2fe   :  { %1788 = vmatmul.bf16.vlgmr.msrb.gmra.mxu2 %v1334_v45  ;;  %1801 = vmatmul.bf16.vlgmr.msrb.gmra.mxu3 %v1335_v46 }
 0x366   :  { %v1763_v49 = vpop.f32.mrf.mxu0  ;;  %v1776_v50 = vpop.f32.mrf.mxu1 }
 0x36e   :  { %v1765_v52 = vpop.f32.mrf.mxu0  ;;  %v1778_v53 = vpop.f32.mrf.mxu1 }
 0x371   :  { %v1737_v55 = vpop.f32.mrf.mxu2  ;;  %v1750_v56 = vpop.f32.mrf.mxu3 }
 0x372   :  { %v1738_v57 = vadd.f32 %v1737_v55, %v1404_v54 }
 0x374   :  { %v1751_v58 = vadd.f32 %v1750_v56, %v1738_v57 }
 0x376   :  { %v1764_v59 = vadd.f32 %v1763_v49, %v1751_v58  ;;  %v1815_v60 = vpop.f32.mrf.mxu0  ;;  %v1828_v63 = vpop.f32.mrf.mxu1 }
 0x378   :  { %v1777_v0 = vadd.f32 %v1776_v50, %v1764_v59 }
 0x379   :  { %v1739_v1 = vpop.f32.mrf.mxu2  ;;  %v1752_v2 = vpop.f32.mrf.mxu3 }
 0x37a   :  { %v1832_v3 = vsub.f32 0.0, %v1777_v0 }
 0x37c   :  { %v1834_v4 = vmul.f32 1.442695, %v1832_v3 }
 0x37e   :  { %2895 = vpow2.f32 %v1834_v4  ;;  %v1817_v5 = vpop.f32.mrf.mxu0  ;;  %v1830_v6 = vpop.f32.mrf.mxu1 }
 0x381   :  { %v1789_v8 = vpop.f32.mrf.mxu2  ;;  %v1802_v9 = vpop.f32.mrf.mxu3 }
 0x382   :  { %v1790_v10 = vadd.f32 %v1789_v8, %v1405_v7 }
 0x384   :  { %v2896_v11 = vpop.eup %2895  ;;  %v1803_v12 = vadd.f32 %v1802_v9, %v1790_v10 }
 0x385   :  { %v1838_v13 = vadd.f32 1.0, %v2896_v11 }
 0x386   :  { %v1816_v14 = vadd.f32 %v1815_v60, %v1803_v12 }
 0x387   :  { %2897 = vrcp.f32 %v1838_v13 }
 0x388   :  { %v1829_v15 = vadd.f32 %v1828_v63, %v1816_v14 }
 0x389   :  { %v1791_v16 = vpop.f32.mrf.mxu2  ;;  %v1804_v17 = vpop.f32.mrf.mxu3 }
 0x38a   :  { %v1833_v61 = vsub.f32 0.0, %v1829_v15 }
 0x38c   :  { %v1836_v62 = vmul.f32 1.442695, %v1833_v61 }
 0x38d   :  { %v2898_v18 = vpop.eup %2897 }
 0x38e   :  { %v1842_v19 = vmax.f32 %v2898_v18, 0.0  ;;  %2899 = vpow2.f32 %v1836_v62 }
 0x390   :  { %v1844_v20 = vmin.f32 %v1842_v19, 1.0 }
 0x392   :  { %1846 = vst [vmem:[%s4129_s13] sm:$0xff] %v1844_v20 }
 0x394   :  { %v2900_v21 = vpop.eup %2899 }
 0x395   :  { %v1839_v22 = vadd.f32 1.0, %v2900_v21 }
 0x397   :  { %2901 = vrcp.f32 %v1839_v22 }
 0x39d   :  { %v2902_v23 = vpop.eup %2901 }
 0x39e   :  { %v1843_v24 = vmax.f32 %v2902_v23, 0.0 }
 0x3a0   :  { %v1845_v25 = vmin.f32 %v1843_v24, 1.0 }
 0x3a2   :  { %1847 = vst [vmem:[%s4129_s13 + $0x8] sm:$0xff] %v1845_v25 }

</bundles_post_ra>
